<compile_context>
chip_gen: v6e
topology: v6e:2x2x1
jax: 0.10.0
libtpu: 0.0.40
codegen_flags: <defaults>
</compile_context>

<pallas_src>
import functools

import jax
import jax.numpy as jnp
from jax import lax
from jax.experimental import pallas as pl
from jax.experimental.pallas import tpu as pltpu

F32 = jnp.float32
NEG_INF = -1e9
ENC_TC = 8                       # encoder timesteps per grid step
DEC_TC = 8                       # decoder timesteps per grid step
VMEM_LIMIT = 48 * 1024 * 1024    # explicit headroom (v7x VMEM is 64 MiB)


# -----------------------------------------------------------------------------
# Bidirectional encoder LSTM kernel (time-chunked, fused 4H gates).
# grid = (direction, time_chunk); h/c carried in resident output blocks.
# Input projections (x @ W_ih + b, all timesteps, both directions) are hoisted
# to one XLA einsum; the backward direction's gx / validity mask are pre-flipped
# so the in-kernel processing order is memory order for both directions.
# Packed-sequence semantics: state only updates where valid, outputs 0 past len.
# -----------------------------------------------------------------------------
def _bilstm_kernel(valid_ref, gx_ref, whh_ref, out_ref, hn_ref, cn_ref, *, Tc, H):
    cj = pl.program_id(1)

    @pl.when(cj == 0)
    def _():
        hn_ref[...] = jnp.zeros_like(hn_ref)
        cn_ref[...] = jnp.zeros_like(cn_ref)

    h = hn_ref[0]                               # [B, H]
    c = cn_ref[0]                               # [B, H]
    whh = whh_ref[0]                            # [H, 4H]  (fused i|f|g|o gates)

    for k in range(Tc):                         # fully unrolled chunk loop
        z = gx_ref[0, k] + jnp.dot(h, whh, preferred_element_type=F32)   # [B, 4H]
        i_g = jax.nn.sigmoid(z[:, 0 * H:1 * H])
        f_g = jax.nn.sigmoid(z[:, 1 * H:2 * H])
        g_g = jnp.tanh(z[:, 2 * H:3 * H])
        o_g = jax.nn.sigmoid(z[:, 3 * H:4 * H])
        c_new = f_g * c + i_g * g_g
        h_new = o_g * jnp.tanh(c_new)

        valid = valid_ref[0, k]                 # [B, 1] — packed-seq masking
        h = jnp.where(valid > 0, h_new, h)
        c = jnp.where(valid > 0, c_new, c)
        # TODO(synk): for large H, write the chunk as a [B, Tc*H] lane-dense slab.
        out_ref[0, k] = jnp.where(valid > 0, h_new, jnp.zeros_like(h_new))

    hn_ref[0] = h
    cn_ref[0] = c


def bilstm_encoder(gx, valid, w_hh, S_pad, B, H, Tc):
    """gx: [2, S_pad, B, 4H] (backward dir pre-flipped), valid: [2, S_pad, B, 1],
    w_hh: [2, H, 4H]."""
    Sc = S_pad // Tc
    kern = functools.partial(_bilstm_kernel, Tc=Tc, H=H)
    outs, h_n, c_n = pl.pallas_call(
        kern,
        out_shape=(jax.ShapeDtypeStruct((2, S_pad, B, H), F32),
                   jax.ShapeDtypeStruct((2, B, H), F32),
                   jax.ShapeDtypeStruct((2, B, H), F32)),
        grid_spec=pltpu.PrefetchScalarGridSpec(
            num_scalar_prefetch=0,
            grid=(2, Sc),
            in_specs=[
                pl.BlockSpec((1, Tc, B, 1), lambda d, cj: (d, cj, 0, 0)),      # validity
                pl.BlockSpec((1, Tc, B, 4 * H), lambda d, cj: (d, cj, 0, 0)),  # gx (lane-dense)
                pl.BlockSpec((1, H, 4 * H), lambda d, cj: (d, 0, 0)),          # W_hh (resident/dir)
            ],
            out_specs=(
                pl.BlockSpec((1, Tc, B, H), lambda d, cj: (d, cj, 0, 0)),
                pl.BlockSpec((1, B, H), lambda d, cj: (d, 0, 0)),              # h carry / h_n
                pl.BlockSpec((1, B, H), lambda d, cj: (d, 0, 0)),              # c carry / c_n
            ),
        ),
        compiler_params=pltpu.CompilerParams(
            dimension_semantics=("parallel", "arbitrary"),
            vmem_limit_bytes=VMEM_LIMIT),
    )(valid, gx, w_hh)
    return outs, h_n, c_n


# -----------------------------------------------------------------------------
# Encoder epilogue kernel: fused bridge (h0, c0) + hoisted attention keys
#   ep = enc_outputs @ W_ae + b_attn   (computed ONCE, reused every decode step)
# -----------------------------------------------------------------------------
def _enc_epilogue_kernel(hcat_ref, ccat_ref, enc_ref, wbh_ref, bbh_ref,
                         wbc_ref, bbc_ref, wae_ref, ba_ref,
                         h0_ref, c0_ref, ep_ref):
    h0_ref[...] = jnp.tanh(
        jnp.dot(hcat_ref[...], wbh_ref[...], preferred_element_type=F32)
        + bbh_ref[...])
    c0_ref[...] = jnp.tanh(
        jnp.dot(ccat_ref[...], wbc_ref[...], preferred_element_type=F32)
        + bbc_ref[...])
    enc = enc_ref[...]                          # [B, S, 2H]
    B, S, EH = enc.shape
    ep = jnp.dot(enc.reshape(B * S, EH), wae_ref[...],
                 preferred_element_type=F32).reshape(B, S, -1)
    ep_ref[...] = ep + ba_ref[...][None, :, :]


def encoder_epilogue(hcat, ccat, enc_outputs, params):
    B, S, _ = enc_outputs.shape
    H = params["bridge_w_h"].shape[1]
    A = params["w_attn_e"].shape[1]
    vmem = pl.BlockSpec(memory_space=pltpu.MemorySpace.VMEM)
    return pl.pallas_call(
        _enc_epilogue_kernel,
        out_shape=(jax.ShapeDtypeStruct((B, H), F32),
                   jax.ShapeDtypeStruct((B, H), F32),
                   jax.ShapeDtypeStruct((B, S, A), F32)),
        in_specs=[vmem] * 9,
        out_specs=(vmem, vmem, vmem),
        compiler_params=pltpu.CompilerParams(vmem_limit_bytes=VMEM_LIMIT),
    )(hcat, ccat, enc_outputs,
      params["bridge_w_h"], params["bridge_b_h"],
      params["bridge_w_c"], params["bridge_b_c"],
      params["w_attn_e"], params["b_attn"])


# -----------------------------------------------------------------------------
# Fused, time-chunked decode-loop kernel: ONE pallas_call, Tc steps per grid
# step. Per step: additive attention (keys precomputed) + masked softmax +
# context + fused-gate LSTM cell + lane-dense (V padded to 128k) output
# projection + greedy-feedback embedding. h/c carried in resident output
# blocks; greedy-feedback embedding carried in VMEM scratch; teacher-forcing
# flags in SMEM via scalar prefetch.
# -----------------------------------------------------------------------------
def _decoder_kernel(tf_ref,                                    # scalar prefetch (SMEM)
                    temb_ref, h0_ref, c0_ref, enc_ref, ep_ref, mask_ref,
                    wah_ref, va_ref, wde_ref, wdc_ref, wdh_ref, bd_ref,
                    woh_ref, woc_ref, woe_ref, bo_ref, tbl_ref,
                    logits_ref, attn_ref, hn_ref, cn_ref,
                    prev_emb, *, Tc, H):
    cj = pl.program_id(0)

    @pl.when(cj == 0)
    def _():
        hn_ref[...] = h0_ref[...]
        cn_ref[...] = c0_ref[...]
        prev_emb[...] = jnp.zeros_like(prev_emb)

    h = hn_ref[...]                       # [B, H]
    c = cn_ref[...]                       # [B, H]
    pe = prev_emb[...]                    # [B, E]  (greedy feedback carry)

    enc = enc_ref[...]                    # [B, S, 2H]  (VMEM-resident)
    ep = ep_ref[...]                      # [B, S, A]   (hoisted enc @ W_ae + b)
    mask = mask_ref[...]                  # [B, S]
    wah = wah_ref[...]
    va = va_ref[...]
    wde = wde_ref[...]                    # [E, 4H]
    wdc = wdc_ref[...]                    # [2H, 4H]
    wdh = wdh_ref[...]                    # [H, 4H]
    bd = bd_ref[...]                      # [1, 4H]
    woh = woh_ref[...]
    woc = woc_ref[...]
    woe = woe_ref[...]
    bo = bo_ref[...]
    tbl = tbl_ref[...]                    # [Vp, E] (padded rows are zero)
    Vp = tbl.shape[0]

    for k in range(Tc):                   # fully unrolled chunk loop
        s = cj * Tc + k
        # Teacher-forced token (streamed) or previous greedy argmax embedding.
        use_teacher = jnp.logical_or(s == 0, tf_ref[s] != 0)
        wt = use_teacher.astype(F32)
        emb = wt * temb_ref[k] + (1.0 - wt) * pe                 # [B, E]

        # --- Bahdanau additive attention (VPU broadcast-mul + lane reduce) ---
        hp = jnp.dot(h, wah, preferred_element_type=F32)         # [B, A]
        energy = jnp.tanh(ep + hp[:, None, :])                   # [B, S, A]
        scores = jnp.sum(energy * va[None, :, :], axis=-1)       # [B, S]
        scores = jnp.where(mask > 0, scores, NEG_INF)
        scores = scores - jnp.max(scores, axis=-1, keepdims=True)
        e = jnp.exp(scores)
        # approx reciprocal: EUP slot, ~1e-3 relative vs exact softmax (inference-OK)
        attn = e * pl.reciprocal(jnp.sum(e, axis=-1, keepdims=True), approx=True)
        context = jnp.sum(attn[:, :, None] * enc, axis=1)        # [B, 2H]

        # --- decoder LSTM cell: ONE lane-dense [*, 4H] accumulator ---
        z = (jnp.dot(emb, wde, preferred_element_type=F32)
             + jnp.dot(context, wdc, preferred_element_type=F32)
             + jnp.dot(h, wdh, preferred_element_type=F32)
             + bd)                                               # [B, 4H]
        i_g = jax.nn.sigmoid(z[:, 0 * H:1 * H])
        f_g = jax.nn.sigmoid(z[:, 1 * H:2 * H])
        g_g = jnp.tanh(z[:, 2 * H:3 * H])
        o_g = jax.nn.sigmoid(z[:, 3 * H:4 * H])
        c = f_g * c + i_g * g_g
        h = o_g * jnp.tanh(c)

        # --- output projection on [h ; context ; emb]; V padded to 128k lanes ---
        logits = (jnp.dot(h, woh, preferred_element_type=F32)
                  + jnp.dot(context, woc, preferred_element_type=F32)
                  + jnp.dot(emb, woe, preferred_element_type=F32)
                  + bo)                                          # [B, Vp]
        logits_ref[k] = logits                                   # unmasked 128-lane store
        attn_ref[k] = attn

        # --- greedy feedback: embedding of first argmax(logits) ---
        # TODO(synk): at production vocab sizes replace with SMEM-index DMA gather.
        iota_f = lax.broadcasted_iota(F32, logits.shape, 1)
        mx = jnp.max(logits, axis=-1, keepdims=True)
        amax = jnp.min(jnp.where(logits >= mx, iota_f, jnp.float32(Vp)),
                       axis=-1, keepdims=True)
        onehot = (iota_f == amax).astype(F32)
        pe = jnp.dot(onehot, tbl, preferred_element_type=F32)    # [B, E]

    hn_ref[...] = h
    cn_ref[...] = c
    prev_emb[...] = pe


def decode_loop(params, teach_emb, tf_flags, h0, c0, enc_outputs, ep, mask,
                dec_tc=DEC_TC):
    Tm1, B, E = teach_emb.shape
    H = h0.shape[1]
    S = mask.shape[1]
    A = ep.shape[2]
    H2 = enc_outputs.shape[2]
    V = params["w_out_h"].shape[1]

    # Vocab padded to a lane-dense multiple of 128; padded columns get -1e9
    # bias (zero weights) so argmax/softmax never select them.
    Vp = ((V + 127) // 128) * 128
    pv = Vp - V
    woh = jnp.pad(params["w_out_h"], ((0, 0), (0, pv)))
    woc = jnp.pad(params["w_out_c"], ((0, 0), (0, pv)))
    woe = jnp.pad(params["w_out_e"], ((0, 0), (0, pv)))
    bo = jnp.pad(params["b_out"], ((0, 0), (0, pv)), constant_values=NEG_INF)
    tbl = jnp.pad(params["tgt_emb"], ((0, pv), (0, 0)))

    # Pad decode steps to a multiple of the chunk size (extra steps discarded).
    Tp = ((Tm1 + dec_tc - 1) // dec_tc) * dec_tc
    if Tp != Tm1:
        teach_emb = jnp.pad(teach_emb, ((0, Tp - Tm1), (0, 0), (0, 0)))
        tf_flags = jnp.pad(tf_flags, (0, Tp - Tm1), constant_values=1)
    nchunks = Tp // dec_tc

    def const(shape):                      # resident operand (single DMA)
        return pl.BlockSpec(shape, lambda cj, tf: (0,) * len(shape))

    kern = functools.partial(_decoder_kernel, Tc=dec_tc, H=H)
    logits, attn, _, _ = pl.pallas_call(
        kern,
        out_shape=(jax.ShapeDtypeStruct((Tp, B, Vp), F32),
                   jax.ShapeDtypeStruct((Tp, B, S), F32),
                   jax.ShapeDtypeStruct((B, H), F32),
                   jax.ShapeDtypeStruct((B, H), F32)),
        grid_spec=pltpu.PrefetchScalarGridSpec(
            num_scalar_prefetch=1,         # teacher-forcing flags -> SMEM
            grid=(nchunks,),
            in_specs=[
                pl.BlockSpec((dec_tc, B, E), lambda cj, tf: (cj, 0, 0)),  # teacher emb chunk
                const((B, H)), const((B, H)),                             # h0, c0
                const((B, S, H2)), const((B, S, A)), const((B, S)),       # enc, ep, mask
                const((H, A)), const((1, A)),                             # attention
                const((E, 4 * H)), const((H2, 4 * H)),
                const((H, 4 * H)), const((1, 4 * H)),                     # fused LSTM cell
                const((H, Vp)), const((H2, Vp)), const((E, Vp)), const((1, Vp)),  # out proj
                const((Vp, E)),                                           # tgt embedding table
            ],
            out_specs=(
                pl.BlockSpec((dec_tc, B, Vp), lambda cj, tf: (cj, 0, 0)),
                pl.BlockSpec((dec_tc, B, S), lambda cj, tf: (cj, 0, 0)),
                pl.BlockSpec((B, H), lambda cj, tf: (0, 0)),              # h carry
                pl.BlockSpec((B, H), lambda cj, tf: (0, 0)),              # c carry
            ),
            scratch_shapes=[pltpu.VMEM((B, E), F32)],                     # greedy feedback emb
        ),
        compiler_params=pltpu.CompilerParams(
            dimension_semantics=("arbitrary",),
            vmem_limit_bytes=VMEM_LIMIT),
    )(tf_flags, teach_emb, h0, c0, enc_outputs, ep, mask,
      params["w_attn_h"], params["v_attn"],
      params["w_dec_e"], params["w_dec_c"], params["w_dec_h"], params["b_dec"],
      woh, woc, woe, bo, tbl)
    return logits[:Tm1, :, :V], attn[:Tm1]


# -----------------------------------------------------------------------------
# Model glue (embedding gathers and hoisted batched input projections in XLA).
# -----------------------------------------------------------------------------
def encoder_forward(params, src, src_lengths, enc_tc=ENC_TC):
    B, S = src.shape
    H = params["enc_w_hh"].shape[1]
    emb = params["src_emb"][src]                              # [B, S, E] gather (XLA glue)
    x = jnp.transpose(emb, (1, 0, 2))                         # [S, B, E]

    # Hoisted, fused-gate, lane-dense (4H = 128) input projections; backward
    # direction pre-flipped so in-kernel processing order == memory order.
    gx_f = jnp.einsum('sbe,eh->sbh', x, params["enc_w_ih"][0]) + params["enc_b"][0]
    gx_b = jnp.einsum('sbe,eh->sbh', x[::-1], params["enc_w_ih"][1]) + params["enc_b"][1]
    gx = jnp.stack([gx_f, gx_b])                              # [2, S, B, 4H]

    lens = src_lengths.astype(jnp.int32)
    pos = jnp.arange(S, dtype=jnp.int32)
    valid_f = (pos[:, None] < lens[None, :]).astype(F32)      # [S, B]
    valid = jnp.stack([valid_f, valid_f[::-1]])[..., None]    # [2, S, B, 1]

    S_pad = ((S + enc_tc - 1) // enc_tc) * enc_tc             # padded steps are invalid
    if S_pad != S:
        gx = jnp.pad(gx, ((0, 0), (0, S_pad - S), (0, 0), (0, 0)))
        valid = jnp.pad(valid, ((0, 0), (0, S_pad - S), (0, 0), (0, 0)))

    outs, h_n, c_n = bilstm_encoder(gx, valid, params["enc_w_hh"], S_pad, B, H, enc_tc)

    out_f = outs[0, :S]                                       # [S, B, H]
    out_b = outs[1, :S][::-1]                                 # re-align backward direction
    enc_outputs = jnp.transpose(jnp.concatenate([out_f, out_b], axis=-1),
                                (1, 0, 2))                    # [B, S, 2H]

    hcat = jnp.concatenate([h_n[0], h_n[1]], axis=-1)
    ccat = jnp.concatenate([c_n[0], c_n[1]], axis=-1)
    h0, c0, ep = encoder_epilogue(hcat, ccat, enc_outputs, params)
    return enc_outputs, ep, h0, c0


def nmt_forward(params, src, src_lengths, tgt, teacher_forcing_ratio=0.5,
                pad_idx=1, key=None):
    if key is None:
        key = jax.random.PRNGKey(0)
    B, S = src.shape
    T = tgt.shape[1]
    V = params["tgt_emb"].shape[0]

    encoder_mask = (src != pad_idx).astype(F32)               # [B, S]
    enc_outputs, ep, h0, c0 = encoder_forward(params, src, src_lengths)

    # Teacher-forcing coin flips drawn up front (one per target step) so the
    # whole decode loop runs as a single fused Pallas grid.
    tf_flags = (jax.random.uniform(key, (T - 1,))
                < teacher_forcing_ratio).astype(jnp.int32)

    teach_emb = params["tgt_emb"][tgt[:, :T - 1]]             # [B, T-1, E]
    teach_emb = jnp.transpose(teach_emb, (1, 0, 2))           # [T-1, B, E]

    logits, attn = decode_loop(params, teach_emb, tf_flags, h0, c0,
                               enc_outputs, ep, encoder_mask)

    outputs = jnp.concatenate(
        [jnp.zeros((B, 1, V), F32), jnp.transpose(logits, (1, 0, 2))], axis=1)
    attentions = jnp.concatenate(
        [jnp.zeros((B, 1, S), F32), jnp.transpose(attn, (1, 0, 2))], axis=1)
    return outputs, attentions


# -----------------------------------------------------------------------------
# Deterministic parameter initialization (fused i|f|g|o gate layout along lanes).
# -----------------------------------------------------------------------------
def init_params(key, src_vocab, tgt_vocab, E, H, A, pad_idx):
    keys = jax.random.split(key, 32)
    it = iter(keys)

    def rnd(shape, scale=0.1):
        return jax.random.normal(next(it), shape, dtype=F32) * scale

    p = {}
    src_emb = rnd((src_vocab, E))
    p["src_emb"] = src_emb.at[pad_idx].set(0.0)       # nn.Embedding(padding_idx)
    p["tgt_emb"] = rnd((tgt_vocab, E))
    p["enc_w_ih"] = rnd((2, E, 4 * H))                # (dir, E, gates i|f|g|o along lanes)
    p["enc_w_hh"] = rnd((2, H, 4 * H))
    p["enc_b"] = rnd((2, 1, 4 * H))                   # b_ih + b_hh folded
    p["bridge_w_h"] = rnd((2 * H, H)); p["bridge_b_h"] = rnd((1, H))
    p["bridge_w_c"] = rnd((2 * H, H)); p["bridge_b_c"] = rnd((1, H))
    p["w_attn_h"] = rnd((H, A))                       # additive attention
    p["w_attn_e"] = rnd((2 * H, A))
    p["b_attn"] = rnd((1, A))
    p["v_attn"] = rnd((1, A))                         # row vector (VPU score reduce)
    p["w_dec_e"] = rnd((E, 4 * H))                    # decoder LSTM cell, fused gates
    p["w_dec_c"] = rnd((2 * H, 4 * H))
    p["w_dec_h"] = rnd((H, 4 * H))
    p["b_dec"] = rnd((1, 4 * H))
    p["w_out_h"] = rnd((H, tgt_vocab))                # output projection
    p["w_out_c"] = rnd((2 * H, tgt_vocab))
    p["w_out_e"] = rnd((E, tgt_vocab))
    p["b_out"] = rnd((1, tgt_vocab))
    return p


if __name__ == "__main__":
    SRC_VOCAB, TGT_VOCAB = 32, 32
    E, H, A = 16, 32, 16          # embedding_dim, hidden_dim, attention_dim
    B, S, T = 2, 8, 6             # batch, src_len, tgt_len
    PAD = 1

    key = jax.random.PRNGKey(0)
    kp, ks, kt = jax.random.split(key, 3)
    params = init_params(kp, SRC_VOCAB, TGT_VOCAB, E, H, A, PAD)

    src = jax.random.randint(ks, (B, S), 4, SRC_VOCAB, dtype=jnp.int32)
    src_lengths = jnp.array([S, 5], dtype=jnp.int32)
    pos = jnp.arange(S)[None, :]
    src = jnp.where(pos < src_lengths[:, None], src, PAD)   # pad tail positions
    tgt = jax.random.randint(kt, (B, T), 4, TGT_VOCAB, dtype=jnp.int32)
    tgt = tgt.at[:, 0].set(2)                                # <sos>

    outputs, attentions = nmt_forward(params, src, src_lengths, tgt,
                                      teacher_forcing_ratio=0.5, pad_idx=PAD,
                                      key=jax.random.PRNGKey(123))
    jax.block_until_ready((outputs, attentions))
    assert outputs.shape == (B, T, TGT_VOCAB)
    assert attentions.shape == (B, T, S)
    assert bool(jnp.all(jnp.isfinite(outputs))) and bool(jnp.all(jnp.isfinite(attentions)))
    print("KERNEL_OK")
</pallas_src>

<mosaic_0001>
module attributes {stable_mosaic.version = 11 : i64} {
  func.func @_bilstm_kernel(%arg0: i32, %arg1: i32, %arg2: memref<1x8x2x1xf32, #tpu.memory_space<vmem>>, %arg3: memref<1x8x2x128xf32, #tpu.memory_space<vmem>>, %arg4: memref<1x32x128xf32, #tpu.memory_space<vmem>>, %arg5: memref<1x8x2x32xf32, #tpu.memory_space<vmem>>, %arg6: memref<1x2x32xf32, #tpu.memory_space<vmem>>, %arg7: memref<1x2x32xf32, #tpu.memory_space<vmem>>) attributes {dimension_semantics = [#tpu.dimension_semantics<parallel>, #tpu.dimension_semantics<arbitrary>], iteration_bounds = array<i64: 2, 1>, scalar_prefetch = 0 : i64, scratch_operands = 0 : i64, tpu.core_type = #tpu.core_type<tc>, window_params = [{transform_indices = @transform_0, window_bounds = array<i64: 1, 8, 2, 1>}, {transform_indices = @transform_1, window_bounds = array<i64: 1, 8, 2, 128>}, {transform_indices = @transform_2, window_bounds = array<i64: 1, 32, 128>}, {transform_indices = @transform_3, window_bounds = array<i64: 1, 8, 2, 32>}, {transform_indices = @transform_4, window_bounds = array<i64: 1, 2, 32>}, {transform_indices = @transform_5, window_bounds = array<i64: 1, 2, 32>}]} {
    %c0_i32 = arith.constant 0 : i32
    %0 = arith.cmpi eq, %arg1, %c0_i32 : i32
    %1 = arith.extui %0 : i1 to i32
    %c0_i32_0 = arith.constant 0 : i32
    %2 = arith.cmpi ne, %1, %c0_i32_0 : i32
    scf.if %2 {
      %cst_167 = arith.constant 0.000000e+00 : f32
      %415 = vector.broadcast %cst_167 : f32 to vector<1x2x32xf32>
      %c0_168 = arith.constant 0 : index
      %c0_169 = arith.constant 0 : index
      %c0_170 = arith.constant 0 : index
      %416 = vector.load %arg6[%c0_168, %c0_169, %c0_170] : memref<1x2x32xf32, #tpu.memory_space<vmem>>, vector<1x2x32xf32>
      tpu.vector_store %arg6[%c0_168, %c0_169, %c0_170], %415 {strides = array<i32>} : memref<1x2x32xf32, #tpu.memory_space<vmem>>, vector<1x2x32xf32>,
      %cst_171 = arith.constant 0.000000e+00 : f32
      %417 = vector.broadcast %cst_171 : f32 to vector<1x2x32xf32>
      %c0_172 = arith.constant 0 : index
      %c0_173 = arith.constant 0 : index
      %c0_174 = arith.constant 0 : index
      %418 = vector.load %arg7[%c0_172, %c0_173, %c0_174] : memref<1x2x32xf32, #tpu.memory_space<vmem>>, vector<1x2x32xf32>
      tpu.vector_store %arg7[%c0_172, %c0_173, %c0_174], %417 {strides = array<i32>} : memref<1x2x32xf32, #tpu.memory_space<vmem>>, vector<1x2x32xf32>,
    } else {
    }
    %c0 = arith.constant 0 : index
    %c0_1 = arith.constant 0 : index
    %c0_2 = arith.constant 0 : index
    %3 = vector.load %arg6[%c0, %c0_1, %c0_2] : memref<1x2x32xf32, #tpu.memory_space<vmem>>, vector<1x2x32xf32>
    %4 = vector.shape_cast %3 : vector<1x2x32xf32> to vector<2x32xf32>
    %c0_3 = arith.constant 0 : index
    %c0_4 = arith.constant 0 : index
    %c0_5 = arith.constant 0 : index
    %5 = vector.load %arg7[%c0_3, %c0_4, %c0_5] : memref<1x2x32xf32, #tpu.memory_space<vmem>>, vector<1x2x32xf32>
    %6 = vector.shape_cast %5 : vector<1x2x32xf32> to vector<2x32xf32>
    %c0_6 = arith.constant 0 : index
    %c0_7 = arith.constant 0 : index
    %c0_8 = arith.constant 0 : index
    %7 = vector.load %arg4[%c0_6, %c0_7, %c0_8] : memref<1x32x128xf32, #tpu.memory_space<vmem>>, vector<1x32x128xf32>
    %8 = vector.shape_cast %7 : vector<1x32x128xf32> to vector<32x128xf32>
    %c0_9 = arith.constant 0 : index
    %c0_10 = arith.constant 0 : index
    %c0_11 = arith.constant 0 : index
    %c0_12 = arith.constant 0 : index
    %9 = vector.load %arg3[%c0_9, %c0_10, %c0_11, %c0_12] : memref<1x8x2x128xf32, #tpu.memory_space<vmem>>, vector<1x1x2x128xf32>
    %10 = vector.shape_cast %9 : vector<1x1x2x128xf32> to vector<2x128xf32>
    %cst = arith.constant dense<0.000000e+00> : vector<2x128xf32>
    %11 = tpu.matmul %4, %8, %cst {dimension_numbers = #tpu.dot_dimension_numbers<[1], [0], [0], [1], [0, 0, 1, 1], [], []>} : vector<2x32xf32>, vector<32x128xf32>, vector<2x128xf32> -> vector<2x128xf32>
    %12 = arith.addf %10, %11 : vector<2x128xf32>
    %13 = vector.extract_strided_slice %12 {offsets = [0, 0], sizes = [2, 32], strides = [1, 1]} : vector<2x128xf32> to vector<2x32xf32>
    %14 = arith.negf %13 : vector<2x32xf32>
    %15 = math.exp %14 : vector<2x32xf32>
    %cst_13 = arith.constant 1.000000e+00 : f32
    %16 = vector.broadcast %cst_13 : f32 to vector<2x32xf32>
    %17 = arith.addf %16, %15 : vector<2x32xf32>
    %18 = arith.divf %16, %17 : vector<2x32xf32>
    %19 = vector.extract_strided_slice %12 {offsets = [0, 32], sizes = [2, 32], strides = [1, 1]} : vector<2x128xf32> to vector<2x32xf32>
    %20 = arith.negf %19 : vector<2x32xf32>
    %21 = math.exp %20 : vector<2x32xf32>
    %cst_14 = arith.constant 1.000000e+00 : f32
    %22 = vector.broadcast %cst_14 : f32 to vector<2x32xf32>
    %23 = arith.addf %22, %21 : vector<2x32xf32>
    %24 = arith.divf %22, %23 : vector<2x32xf32>
    %25 = vector.extract_strided_slice %12 {offsets = [0, 64], sizes = [2, 32], strides = [1, 1]} : vector<2x128xf32> to vector<2x32xf32>
    %26 = math.tanh %25 : vector<2x32xf32>
    %27 = vector.extract_strided_slice %12 {offsets = [0, 96], sizes = [2, 32], strides = [1, 1]} : vector<2x128xf32> to vector<2x32xf32>
    %28 = arith.negf %27 : vector<2x32xf32>
    %29 = math.exp %28 : vector<2x32xf32>
    %cst_15 = arith.constant 1.000000e+00 : f32
    %30 = vector.broadcast %cst_15 : f32 to vector<2x32xf32>
    %31 = arith.addf %30, %29 : vector<2x32xf32>
    %32 = arith.divf %30, %31 : vector<2x32xf32>
    %33 = arith.mulf %24, %6 : vector<2x32xf32>
    %34 = arith.mulf %18, %26 : vector<2x32xf32>
    %35 = arith.addf %33, %34 : vector<2x32xf32>
    %36 = math.tanh %35 : vector<2x32xf32>
    %37 = arith.mulf %32, %36 : vector<2x32xf32>
    %c0_16 = arith.constant 0 : index
    %c0_17 = arith.constant 0 : index
    %c0_18 = arith.constant 0 : index
    %c0_19 = arith.constant 0 : index
    %38 = vector.load %arg2[%c0_16, %c0_17, %c0_18, %c0_19] : memref<1x8x2x1xf32, #tpu.memory_space<vmem>>, vector<1x1x2x1xf32>
    %39 = vector.shape_cast %38 : vector<1x1x2x1xf32> to vector<2x1xf32>
    %cst_20 = arith.constant 0.000000e+00 : f32
    %40 = vector.broadcast %cst_20 : f32 to vector<2x1xf32>
    %41 = arith.cmpf ogt, %39, %40 : vector<2x1xf32>
    %42 = vector.shape_cast %41 : vector<2x1xi1> to vector<2x1xi1>
    %43 = vector.broadcast %42 : vector<2x1xi1> to vector<2x32xi1>
    %44 = arith.select %43, %37, %4 : vector<2x32xi1>, vector<2x32xf32>
    %cst_21 = arith.constant 0.000000e+00 : f32
    %45 = vector.broadcast %cst_21 : f32 to vector<2x1xf32>
    %46 = arith.cmpf ogt, %39, %45 : vector<2x1xf32>
    %47 = vector.shape_cast %46 : vector<2x1xi1> to vector<2x1xi1>
    %48 = vector.broadcast %47 : vector<2x1xi1> to vector<2x32xi1>
    %49 = arith.select %48, %35, %6 : vector<2x32xi1>, vector<2x32xf32>
    %cst_22 = arith.constant 0.000000e+00 : f32
    %50 = vector.broadcast %cst_22 : f32 to vector<2x1xf32>
    %51 = arith.cmpf ogt, %39, %50 : vector<2x1xf32>
    %cst_23 = arith.constant 0.000000e+00 : f32
    %52 = vector.broadcast %cst_23 : f32 to vector<2x32xf32>
    %53 = vector.shape_cast %51 : vector<2x1xi1> to vector<2x1xi1>
    %54 = vector.broadcast %53 : vector<2x1xi1> to vector<2x32xi1>
    %55 = arith.select %54, %37, %52 : vector<2x32xi1>, vector<2x32xf32>
    %c0_24 = arith.constant 0 : index
    %c0_25 = arith.constant 0 : index
    %c0_26 = arith.constant 0 : index
    %c0_27 = arith.constant 0 : index
    %56 = vector.load %arg5[%c0_24, %c0_25, %c0_26, %c0_27] : memref<1x8x2x32xf32, #tpu.memory_space<vmem>>, vector<1x1x2x32xf32>
    %57 = vector.shape_cast %56 : vector<1x1x2x32xf32> to vector<2x32xf32>
    %58 = vector.shape_cast %55 : vector<2x32xf32> to vector<1x1x2x32xf32>
    tpu.vector_store %arg5[%c0_24, %c0_25, %c0_26, %c0_27], %58 {strides = array<i32>} : memref<1x8x2x32xf32, #tpu.memory_space<vmem>>, vector<1x1x2x32xf32>,
    %c0_28 = arith.constant 0 : index
    %c1 = arith.constant 1 : index
    %c0_29 = arith.constant 0 : index
    %c0_30 = arith.constant 0 : index
    %59 = vector.load %arg3[%c0_28, %c1, %c0_29, %c0_30] : memref<1x8x2x128xf32, #tpu.memory_space<vmem>>, vector<1x1x2x128xf32>
    %60 = vector.shape_cast %59 : vector<1x1x2x128xf32> to vector<2x128xf32>
    %cst_31 = arith.constant dense<0.000000e+00> : vector<2x128xf32>
    %61 = tpu.matmul %44, %8, %cst_31 {dimension_numbers = #tpu.dot_dimension_numbers<[1], [0], [0], [1], [0, 0, 1, 1], [], []>} : vector<2x32xf32>, vector<32x128xf32>, vector<2x128xf32> -> vector<2x128xf32>
    %62 = arith.addf %60, %61 : vector<2x128xf32>
    %63 = vector.extract_strided_slice %62 {offsets = [0, 0], sizes = [2, 32], strides = [1, 1]} : vector<2x128xf32> to vector<2x32xf32>
    %64 = arith.negf %63 : vector<2x32xf32>
    %65 = math.exp %64 : vector<2x32xf32>
    %cst_32 = arith.constant 1.000000e+00 : f32
    %66 = vector.broadcast %cst_32 : f32 to vector<2x32xf32>
    %67 = arith.addf %66, %65 : vector<2x32xf32>
    %68 = arith.divf %66, %67 : vector<2x32xf32>
    %69 = vector.extract_strided_slice %62 {offsets = [0, 32], sizes = [2, 32], strides = [1, 1]} : vector<2x128xf32> to vector<2x32xf32>
    %70 = arith.negf %69 : vector<2x32xf32>
    %71 = math.exp %70 : vector<2x32xf32>
    %cst_33 = arith.constant 1.000000e+00 : f32
    %72 = vector.broadcast %cst_33 : f32 to vector<2x32xf32>
    %73 = arith.addf %72, %71 : vector<2x32xf32>
    %74 = arith.divf %72, %73 : vector<2x32xf32>
    %75 = vector.extract_strided_slice %62 {offsets = [0, 64], sizes = [2, 32], strides = [1, 1]} : vector<2x128xf32> to vector<2x32xf32>
    %76 = math.tanh %75 : vector<2x32xf32>
    %77 = vector.extract_strided_slice %62 {offsets = [0, 96], sizes = [2, 32], strides = [1, 1]} : vector<2x128xf32> to vector<2x32xf32>
    %78 = arith.negf %77 : vector<2x32xf32>
    %79 = math.exp %78 : vector<2x32xf32>
    %cst_34 = arith.constant 1.000000e+00 : f32
    %80 = vector.broadcast %cst_34 : f32 to vector<2x32xf32>
    %81 = arith.addf %80, %79 : vector<2x32xf32>
    %82 = arith.divf %80, %81 : vector<2x32xf32>
    %83 = arith.mulf %74, %49 : vector<2x32xf32>
    %84 = arith.mulf %68, %76 : vector<2x32xf32>
    %85 = arith.addf %83, %84 : vector<2x32xf32>
    %86 = math.tanh %85 : vector<2x32xf32>
    %87 = arith.mulf %82, %86 : vector<2x32xf32>
    %c0_35 = arith.constant 0 : index
    %c1_36 = arith.constant 1 : index
    %c0_37 = arith.constant 0 : index
    %c0_38 = arith.constant 0 : index
    %88 = vector.load %arg2[%c0_35, %c1_36, %c0_37, %c0_38] : memref<1x8x2x1xf32, #tpu.memory_space<vmem>>, vector<1x1x2x1xf32>
    %89 = vector.shape_cast %88 : vector<1x1x2x1xf32> to vector<2x1xf32>
    %cst_39 = arith.constant 0.000000e+00 : f32
    %90 = vector.broadcast %cst_39 : f32 to vector<2x1xf32>
    %91 = arith.cmpf ogt, %89, %90 : vector<2x1xf32>
    %92 = vector.shape_cast %91 : vector<2x1xi1> to vector<2x1xi1>
    %93 = vector.broadcast %92 : vector<2x1xi1> to vector<2x32xi1>
    %94 = arith.select %93, %87, %44 : vector<2x32xi1>, vector<2x32xf32>
    %cst_40 = arith.constant 0.000000e+00 : f32
    %95 = vector.broadcast %cst_40 : f32 to vector<2x1xf32>
    %96 = arith.cmpf ogt, %89, %95 : vector<2x1xf32>
    %97 = vector.shape_cast %96 : vector<2x1xi1> to vector<2x1xi1>
    %98 = vector.broadcast %97 : vector<2x1xi1> to vector<2x32xi1>
    %99 = arith.select %98, %85, %49 : vector<2x32xi1>, vector<2x32xf32>
    %cst_41 = arith.constant 0.000000e+00 : f32
    %100 = vector.broadcast %cst_41 : f32 to vector<2x1xf32>
    %101 = arith.cmpf ogt, %89, %100 : vector<2x1xf32>
    %cst_42 = arith.constant 0.000000e+00 : f32
    %102 = vector.broadcast %cst_42 : f32 to vector<2x32xf32>
    %103 = vector.shape_cast %101 : vector<2x1xi1> to vector<2x1xi1>
    %104 = vector.broadcast %103 : vector<2x1xi1> to vector<2x32xi1>
    %105 = arith.select %104, %87, %102 : vector<2x32xi1>, vector<2x32xf32>
    %c0_43 = arith.constant 0 : index
    %c1_44 = arith.constant 1 : index
    %c0_45 = arith.constant 0 : index
    %c0_46 = arith.constant 0 : index
    %106 = vector.load %arg5[%c0_43, %c1_44, %c0_45, %c0_46] : memref<1x8x2x32xf32, #tpu.memory_space<vmem>>, vector<1x1x2x32xf32>
    %107 = vector.shape_cast %106 : vector<1x1x2x32xf32> to vector<2x32xf32>
    %108 = vector.shape_cast %105 : vector<2x32xf32> to vector<1x1x2x32xf32>
    tpu.vector_store %arg5[%c0_43, %c1_44, %c0_45, %c0_46], %108 {strides = array<i32>} : memref<1x8x2x32xf32, #tpu.memory_space<vmem>>, vector<1x1x2x32xf32>,
    %c0_47 = arith.constant 0 : index
    %c2 = arith.constant 2 : index
    %c0_48 = arith.constant 0 : index
    %c0_49 = arith.constant 0 : index
    %109 = vector.load %arg3[%c0_47, %c2, %c0_48, %c0_49] : memref<1x8x2x128xf32, #tpu.memory_space<vmem>>, vector<1x1x2x128xf32>
    %110 = vector.shape_cast %109 : vector<1x1x2x128xf32> to vector<2x128xf32>
    %cst_50 = arith.constant dense<0.000000e+00> : vector<2x128xf32>
    %111 = tpu.matmul %94, %8, %cst_50 {dimension_numbers = #tpu.dot_dimension_numbers<[1], [0], [0], [1], [0, 0, 1, 1], [], []>} : vector<2x32xf32>, vector<32x128xf32>, vector<2x128xf32> -> vector<2x128xf32>
    %112 = arith.addf %110, %111 : vector<2x128xf32>
    %113 = vector.extract_strided_slice %112 {offsets = [0, 0], sizes = [2, 32], strides = [1, 1]} : vector<2x128xf32> to vector<2x32xf32>
    %114 = arith.negf %113 : vector<2x32xf32>
    %115 = math.exp %114 : vector<2x32xf32>
    %cst_51 = arith.constant 1.000000e+00 : f32
    %116 = vector.broadcast %cst_51 : f32 to vector<2x32xf32>
    %117 = arith.addf %116, %115 : vector<2x32xf32>
    %118 = arith.divf %116, %117 : vector<2x32xf32>
    %119 = vector.extract_strided_slice %112 {offsets = [0, 32], sizes = [2, 32], strides = [1, 1]} : vector<2x128xf32> to vector<2x32xf32>
    %120 = arith.negf %119 : vector<2x32xf32>
    %121 = math.exp %120 : vector<2x32xf32>
    %cst_52 = arith.constant 1.000000e+00 : f32
    %122 = vector.broadcast %cst_52 : f32 to vector<2x32xf32>
    %123 = arith.addf %122, %121 : vector<2x32xf32>
    %124 = arith.divf %122, %123 : vector<2x32xf32>
    %125 = vector.extract_strided_slice %112 {offsets = [0, 64], sizes = [2, 32], strides = [1, 1]} : vector<2x128xf32> to vector<2x32xf32>
    %126 = math.tanh %125 : vector<2x32xf32>
    %127 = vector.extract_strided_slice %112 {offsets = [0, 96], sizes = [2, 32], strides = [1, 1]} : vector<2x128xf32> to vector<2x32xf32>
    %128 = arith.negf %127 : vector<2x32xf32>
    %129 = math.exp %128 : vector<2x32xf32>
    %cst_53 = arith.constant 1.000000e+00 : f32
    %130 = vector.broadcast %cst_53 : f32 to vector<2x32xf32>
    %131 = arith.addf %130, %129 : vector<2x32xf32>
    %132 = arith.divf %130, %131 : vector<2x32xf32>
    %133 = arith.mulf %124, %99 : vector<2x32xf32>
    %134 = arith.mulf %118, %126 : vector<2x32xf32>
    %135 = arith.addf %133, %134 : vector<2x32xf32>
    %136 = math.tanh %135 : vector<2x32xf32>
    %137 = arith.mulf %132, %136 : vector<2x32xf32>
    %c0_54 = arith.constant 0 : index
    %c2_55 = arith.constant 2 : index
    %c0_56 = arith.constant 0 : index
    %c0_57 = arith.constant 0 : index
    %138 = vector.load %arg2[%c0_54, %c2_55, %c0_56, %c0_57] : memref<1x8x2x1xf32, #tpu.memory_space<vmem>>, vector<1x1x2x1xf32>
    %139 = vector.shape_cast %138 : vector<1x1x2x1xf32> to vector<2x1xf32>
    %cst_58 = arith.constant 0.000000e+00 : f32
    %140 = vector.broadcast %cst_58 : f32 to vector<2x1xf32>
    %141 = arith.cmpf ogt, %139, %140 : vector<2x1xf32>
    %142 = vector.shape_cast %141 : vector<2x1xi1> to vector<2x1xi1>
    %143 = vector.broadcast %142 : vector<2x1xi1> to vector<2x32xi1>
    %144 = arith.select %143, %137, %94 : vector<2x32xi1>, vector<2x32xf32>
    %cst_59 = arith.constant 0.000000e+00 : f32
    %145 = vector.broadcast %cst_59 : f32 to vector<2x1xf32>
    %146 = arith.cmpf ogt, %139, %145 : vector<2x1xf32>
    %147 = vector.shape_cast %146 : vector<2x1xi1> to vector<2x1xi1>
    %148 = vector.broadcast %147 : vector<2x1xi1> to vector<2x32xi1>
    %149 = arith.select %148, %135, %99 : vector<2x32xi1>, vector<2x32xf32>
    %cst_60 = arith.constant 0.000000e+00 : f32
    %150 = vector.broadcast %cst_60 : f32 to vector<2x1xf32>
    %151 = arith.cmpf ogt, %139, %150 : vector<2x1xf32>
    %cst_61 = arith.constant 0.000000e+00 : f32
    %152 = vector.broadcast %cst_61 : f32 to vector<2x32xf32>
    %153 = vector.shape_cast %151 : vector<2x1xi1> to vector<2x1xi1>
    %154 = vector.broadcast %153 : vector<2x1xi1> to vector<2x32xi1>
    %155 = arith.select %154, %137, %152 : vector<2x32xi1>, vector<2x32xf32>
    %c0_62 = arith.constant 0 : index
    %c2_63 = arith.constant 2 : index
    %c0_64 = arith.constant 0 : index
    %c0_65 = arith.constant 0 : index
    %156 = vector.load %arg5[%c0_62, %c2_63, %c0_64, %c0_65] : memref<1x8x2x32xf32, #tpu.memory_space<vmem>>, vector<1x1x2x32xf32>
    %157 = vector.shape_cast %156 : vector<1x1x2x32xf32> to vector<2x32xf32>
    %158 = vector.shape_cast %155 : vector<2x32xf32> to vector<1x1x2x32xf32>
    tpu.vector_store %arg5[%c0_62, %c2_63, %c0_64, %c0_65], %158 {strides = array<i32>} : memref<1x8x2x32xf32, #tpu.memory_space<vmem>>, vector<1x1x2x32xf32>,
    %c0_66 = arith.constant 0 : index
    %c3 = arith.constant 3 : index
    %c0_67 = arith.constant 0 : index
    %c0_68 = arith.constant 0 : index
    %159 = vector.load %arg3[%c0_66, %c3, %c0_67, %c0_68] : memref<1x8x2x128xf32, #tpu.memory_space<vmem>>, vector<1x1x2x128xf32>
    %160 = vector.shape_cast %159 : vector<1x1x2x128xf32> to vector<2x128xf32>
    %cst_69 = arith.constant dense<0.000000e+00> : vector<2x128xf32>
    %161 = tpu.matmul %144, %8, %cst_69 {dimension_numbers = #tpu.dot_dimension_numbers<[1], [0], [0], [1], [0, 0, 1, 1], [], []>} : vector<2x32xf32>, vector<32x128xf32>, vector<2x128xf32> -> vector<2x128xf32>
    %162 = arith.addf %160, %161 : vector<2x128xf32>
    %163 = vector.extract_strided_slice %162 {offsets = [0, 0], sizes = [2, 32], strides = [1, 1]} : vector<2x128xf32> to vector<2x32xf32>
    %164 = arith.negf %163 : vector<2x32xf32>
    %165 = math.exp %164 : vector<2x32xf32>
    %cst_70 = arith.constant 1.000000e+00 : f32
    %166 = vector.broadcast %cst_70 : f32 to vector<2x32xf32>
    %167 = arith.addf %166, %165 : vector<2x32xf32>
    %168 = arith.divf %166, %167 : vector<2x32xf32>
    %169 = vector.extract_strided_slice %162 {offsets = [0, 32], sizes = [2, 32], strides = [1, 1]} : vector<2x128xf32> to vector<2x32xf32>
    %170 = arith.negf %169 : vector<2x32xf32>
    %171 = math.exp %170 : vector<2x32xf32>
    %cst_71 = arith.constant 1.000000e+00 : f32
    %172 = vector.broadcast %cst_71 : f32 to vector<2x32xf32>
    %173 = arith.addf %172, %171 : vector<2x32xf32>
    %174 = arith.divf %172, %173 : vector<2x32xf32>
    %175 = vector.extract_strided_slice %162 {offsets = [0, 64], sizes = [2, 32], strides = [1, 1]} : vector<2x128xf32> to vector<2x32xf32>
    %176 = math.tanh %175 : vector<2x32xf32>
    %177 = vector.extract_strided_slice %162 {offsets = [0, 96], sizes = [2, 32], strides = [1, 1]} : vector<2x128xf32> to vector<2x32xf32>
    %178 = arith.negf %177 : vector<2x32xf32>
    %179 = math.exp %178 : vector<2x32xf32>
    %cst_72 = arith.constant 1.000000e+00 : f32
    %180 = vector.broadcast %cst_72 : f32 to vector<2x32xf32>
    %181 = arith.addf %180, %179 : vector<2x32xf32>
    %182 = arith.divf %180, %181 : vector<2x32xf32>
    %183 = arith.mulf %174, %149 : vector<2x32xf32>
    %184 = arith.mulf %168, %176 : vector<2x32xf32>
    %185 = arith.addf %183, %184 : vector<2x32xf32>
    %186 = math.tanh %185 : vector<2x32xf32>
    %187 = arith.mulf %182, %186 : vector<2x32xf32>
    %c0_73 = arith.constant 0 : index
    %c3_74 = arith.constant 3 : index
    %c0_75 = arith.constant 0 : index
    %c0_76 = arith.constant 0 : index
    %188 = vector.load %arg2[%c0_73, %c3_74, %c0_75, %c0_76] : memref<1x8x2x1xf32, #tpu.memory_space<vmem>>, vector<1x1x2x1xf32>
    %189 = vector.shape_cast %188 : vector<1x1x2x1xf32> to vector<2x1xf32>
    %cst_77 = arith.constant 0.000000e+00 : f32
    %190 = vector.broadcast %cst_77 : f32 to vector<2x1xf32>
    %191 = arith.cmpf ogt, %189, %190 : vector<2x1xf32>
    %192 = vector.shape_cast %191 : vector<2x1xi1> to vector<2x1xi1>
    %193 = vector.broadcast %192 : vector<2x1xi1> to vector<2x32xi1>
    %194 = arith.select %193, %187, %144 : vector<2x32xi1>, vector<2x32xf32>
    %cst_78 = arith.constant 0.000000e+00 : f32
    %195 = vector.broadcast %cst_78 : f32 to vector<2x1xf32>
    %196 = arith.cmpf ogt, %189, %195 : vector<2x1xf32>
    %197 = vector.shape_cast %196 : vector<2x1xi1> to vector<2x1xi1>
    %198 = vector.broadcast %197 : vector<2x1xi1> to vector<2x32xi1>
    %199 = arith.select %198, %185, %149 : vector<2x32xi1>, vector<2x32xf32>
    %cst_79 = arith.constant 0.000000e+00 : f32
    %200 = vector.broadcast %cst_79 : f32 to vector<2x1xf32>
    %201 = arith.cmpf ogt, %189, %200 : vector<2x1xf32>
    %cst_80 = arith.constant 0.000000e+00 : f32
    %202 = vector.broadcast %cst_80 : f32 to vector<2x32xf32>
    %203 = vector.shape_cast %201 : vector<2x1xi1> to vector<2x1xi1>
    %204 = vector.broadcast %203 : vector<2x1xi1> to vector<2x32xi1>
    %205 = arith.select %204, %187, %202 : vector<2x32xi1>, vector<2x32xf32>
    %c0_81 = arith.constant 0 : index
    %c3_82 = arith.constant 3 : index
    %c0_83 = arith.constant 0 : index
    %c0_84 = arith.constant 0 : index
    %206 = vector.load %arg5[%c0_81, %c3_82, %c0_83, %c0_84] : memref<1x8x2x32xf32, #tpu.memory_space<vmem>>, vector<1x1x2x32xf32>
    %207 = vector.shape_cast %206 : vector<1x1x2x32xf32> to vector<2x32xf32>
    %208 = vector.shape_cast %205 : vector<2x32xf32> to vector<1x1x2x32xf32>
    tpu.vector_store %arg5[%c0_81, %c3_82, %c0_83, %c0_84], %208 {strides = array<i32>} : memref<1x8x2x32xf32, #tpu.memory_space<vmem>>, vector<1x1x2x32xf32>,
    %c0_85 = arith.constant 0 : index
    %c4 = arith.constant 4 : index
    %c0_86 = arith.constant 0 : index
    %c0_87 = arith.constant 0 : index
    %209 = vector.load %arg3[%c0_85, %c4, %c0_86, %c0_87] : memref<1x8x2x128xf32, #tpu.memory_space<vmem>>, vector<1x1x2x128xf32>
    %210 = vector.shape_cast %209 : vector<1x1x2x128xf32> to vector<2x128xf32>
    %cst_88 = arith.constant dense<0.000000e+00> : vector<2x128xf32>
    %211 = tpu.matmul %194, %8, %cst_88 {dimension_numbers = #tpu.dot_dimension_numbers<[1], [0], [0], [1], [0, 0, 1, 1], [], []>} : vector<2x32xf32>, vector<32x128xf32>, vector<2x128xf32> -> vector<2x128xf32>
    %212 = arith.addf %210, %211 : vector<2x128xf32>
    %213 = vector.extract_strided_slice %212 {offsets = [0, 0], sizes = [2, 32], strides = [1, 1]} : vector<2x128xf32> to vector<2x32xf32>
    %214 = arith.negf %213 : vector<2x32xf32>
    %215 = math.exp %214 : vector<2x32xf32>
    %cst_89 = arith.constant 1.000000e+00 : f32
    %216 = vector.broadcast %cst_89 : f32 to vector<2x32xf32>
    %217 = arith.addf %216, %215 : vector<2x32xf32>
    %218 = arith.divf %216, %217 : vector<2x32xf32>
    %219 = vector.extract_strided_slice %212 {offsets = [0, 32], sizes = [2, 32], strides = [1, 1]} : vector<2x128xf32> to vector<2x32xf32>
    %220 = arith.negf %219 : vector<2x32xf32>
    %221 = math.exp %220 : vector<2x32xf32>
    %cst_90 = arith.constant 1.000000e+00 : f32
    %222 = vector.broadcast %cst_90 : f32 to vector<2x32xf32>
    %223 = arith.addf %222, %221 : vector<2x32xf32>
    %224 = arith.divf %222, %223 : vector<2x32xf32>
    %225 = vector.extract_strided_slice %212 {offsets = [0, 64], sizes = [2, 32], strides = [1, 1]} : vector<2x128xf32> to vector<2x32xf32>
    %226 = math.tanh %225 : vector<2x32xf32>
    %227 = vector.extract_strided_slice %212 {offsets = [0, 96], sizes = [2, 32], strides = [1, 1]} : vector<2x128xf32> to vector<2x32xf32>
    %228 = arith.negf %227 : vector<2x32xf32>
    %229 = math.exp %228 : vector<2x32xf32>
    %cst_91 = arith.constant 1.000000e+00 : f32
    %230 = vector.broadcast %cst_91 : f32 to vector<2x32xf32>
    %231 = arith.addf %230, %229 : vector<2x32xf32>
    %232 = arith.divf %230, %231 : vector<2x32xf32>
    %233 = arith.mulf %224, %199 : vector<2x32xf32>
    %234 = arith.mulf %218, %226 : vector<2x32xf32>
    %235 = arith.addf %233, %234 : vector<2x32xf32>
    %236 = math.tanh %235 : vector<2x32xf32>
    %237 = arith.mulf %232, %236 : vector<2x32xf32>
    %c0_92 = arith.constant 0 : index
    %c4_93 = arith.constant 4 : index
    %c0_94 = arith.constant 0 : index
    %c0_95 = arith.constant 0 : index
    %238 = vector.load %arg2[%c0_92, %c4_93, %c0_94, %c0_95] : memref<1x8x2x1xf32, #tpu.memory_space<vmem>>, vector<1x1x2x1xf32>
    %239 = vector.shape_cast %238 : vector<1x1x2x1xf32> to vector<2x1xf32>
    %cst_96 = arith.constant 0.000000e+00 : f32
    %240 = vector.broadcast %cst_96 : f32 to vector<2x1xf32>
    %241 = arith.cmpf ogt, %239, %240 : vector<2x1xf32>
    %242 = vector.shape_cast %241 : vector<2x1xi1> to vector<2x1xi1>
    %243 = vector.broadcast %242 : vector<2x1xi1> to vector<2x32xi1>
    %244 = arith.select %243, %237, %194 : vector<2x32xi1>, vector<2x32xf32>
    %cst_97 = arith.constant 0.000000e+00 : f32
    %245 = vector.broadcast %cst_97 : f32 to vector<2x1xf32>
    %246 = arith.cmpf ogt, %239, %245 : vector<2x1xf32>
    %247 = vector.shape_cast %246 : vector<2x1xi1> to vector<2x1xi1>
    %248 = vector.broadcast %247 : vector<2x1xi1> to vector<2x32xi1>
    %249 = arith.select %248, %235, %199 : vector<2x32xi1>, vector<2x32xf32>
    %cst_98 = arith.constant 0.000000e+00 : f32
    %250 = vector.broadcast %cst_98 : f32 to vector<2x1xf32>
    %251 = arith.cmpf ogt, %239, %250 : vector<2x1xf32>
    %cst_99 = arith.constant 0.000000e+00 : f32
    %252 = vector.broadcast %cst_99 : f32 to vector<2x32xf32>
    %253 = vector.shape_cast %251 : vector<2x1xi1> to vector<2x1xi1>
    %254 = vector.broadcast %253 : vector<2x1xi1> to vector<2x32xi1>
    %255 = arith.select %254, %237, %252 : vector<2x32xi1>, vector<2x32xf32>
    %c0_100 = arith.constant 0 : index
    %c4_101 = arith.constant 4 : index
    %c0_102 = arith.constant 0 : index
    %c0_103 = arith.constant 0 : index
    %256 = vector.load %arg5[%c0_100, %c4_101, %c0_102, %c0_103] : memref<1x8x2x32xf32, #tpu.memory_space<vmem>>, vector<1x1x2x32xf32>
    %257 = vector.shape_cast %256 : vector<1x1x2x32xf32> to vector<2x32xf32>
    %258 = vector.shape_cast %255 : vector<2x32xf32> to vector<1x1x2x32xf32>
    tpu.vector_store %arg5[%c0_100, %c4_101, %c0_102, %c0_103], %258 {strides = array<i32>} : memref<1x8x2x32xf32, #tpu.memory_space<vmem>>, vector<1x1x2x32xf32>,
    %c0_104 = arith.constant 0 : index
    %c5 = arith.constant 5 : index
    %c0_105 = arith.constant 0 : index
    %c0_106 = arith.constant 0 : index
    %259 = vector.load %arg3[%c0_104, %c5, %c0_105, %c0_106] : memref<1x8x2x128xf32, #tpu.memory_space<vmem>>, vector<1x1x2x128xf32>
    %260 = vector.shape_cast %259 : vector<1x1x2x128xf32> to vector<2x128xf32>
    %cst_107 = arith.constant dense<0.000000e+00> : vector<2x128xf32>
    %261 = tpu.matmul %244, %8, %cst_107 {dimension_numbers = #tpu.dot_dimension_numbers<[1], [0], [0], [1], [0, 0, 1, 1], [], []>} : vector<2x32xf32>, vector<32x128xf32>, vector<2x128xf32> -> vector<2x128xf32>
    %262 = arith.addf %260, %261 : vector<2x128xf32>
    %263 = vector.extract_strided_slice %262 {offsets = [0, 0], sizes = [2, 32], strides = [1, 1]} : vector<2x128xf32> to vector<2x32xf32>
    %264 = arith.negf %263 : vector<2x32xf32>
    %265 = math.exp %264 : vector<2x32xf32>
    %cst_108 = arith.constant 1.000000e+00 : f32
    %266 = vector.broadcast %cst_108 : f32 to vector<2x32xf32>
    %267 = arith.addf %266, %265 : vector<2x32xf32>
    %268 = arith.divf %266, %267 : vector<2x32xf32>
    %269 = vector.extract_strided_slice %262 {offsets = [0, 32], sizes = [2, 32], strides = [1, 1]} : vector<2x128xf32> to vector<2x32xf32>
    %270 = arith.negf %269 : vector<2x32xf32>
    %271 = math.exp %270 : vector<2x32xf32>
    %cst_109 = arith.constant 1.000000e+00 : f32
    %272 = vector.broadcast %cst_109 : f32 to vector<2x32xf32>
    %273 = arith.addf %272, %271 : vector<2x32xf32>
    %274 = arith.divf %272, %273 : vector<2x32xf32>
    %275 = vector.extract_strided_slice %262 {offsets = [0, 64], sizes = [2, 32], strides = [1, 1]} : vector<2x128xf32> to vector<2x32xf32>
    %276 = math.tanh %275 : vector<2x32xf32>
    %277 = vector.extract_strided_slice %262 {offsets = [0, 96], sizes = [2, 32], strides = [1, 1]} : vector<2x128xf32> to vector<2x32xf32>
    %278 = arith.negf %277 : vector<2x32xf32>
    %279 = math.exp %278 : vector<2x32xf32>
    %cst_110 = arith.constant 1.000000e+00 : f32
    %280 = vector.broadcast %cst_110 : f32 to vector<2x32xf32>
    %281 = arith.addf %280, %279 : vector<2x32xf32>
    %282 = arith.divf %280, %281 : vector<2x32xf32>
    %283 = arith.mulf %274, %249 : vector<2x32xf32>
    %284 = arith.mulf %268, %276 : vector<2x32xf32>
    %285 = arith.addf %283, %284 : vector<2x32xf32>
    %286 = math.tanh %285 : vector<2x32xf32>
    %287 = arith.mulf %282, %286 : vector<2x32xf32>
    %c0_111 = arith.constant 0 : index
    %c5_112 = arith.constant 5 : index
    %c0_113 = arith.constant 0 : index
    %c0_114 = arith.constant 0 : index
    %288 = vector.load %arg2[%c0_111, %c5_112, %c0_113, %c0_114] : memref<1x8x2x1xf32, #tpu.memory_space<vmem>>, vector<1x1x2x1xf32>
    %289 = vector.shape_cast %288 : vector<1x1x2x1xf32> to vector<2x1xf32>
    %cst_115 = arith.constant 0.000000e+00 : f32
    %290 = vector.broadcast %cst_115 : f32 to vector<2x1xf32>
    %291 = arith.cmpf ogt, %289, %290 : vector<2x1xf32>
    %292 = vector.shape_cast %291 : vector<2x1xi1> to vector<2x1xi1>
    %293 = vector.broadcast %292 : vector<2x1xi1> to vector<2x32xi1>
    %294 = arith.select %293, %287, %244 : vector<2x32xi1>, vector<2x32xf32>
    %cst_116 = arith.constant 0.000000e+00 : f32
    %295 = vector.broadcast %cst_116 : f32 to vector<2x1xf32>
    %296 = arith.cmpf ogt, %289, %295 : vector<2x1xf32>
    %297 = vector.shape_cast %296 : vector<2x1xi1> to vector<2x1xi1>
    %298 = vector.broadcast %297 : vector<2x1xi1> to vector<2x32xi1>
    %299 = arith.select %298, %285, %249 : vector<2x32xi1>, vector<2x32xf32>
    %cst_117 = arith.constant 0.000000e+00 : f32
    %300 = vector.broadcast %cst_117 : f32 to vector<2x1xf32>
    %301 = arith.cmpf ogt, %289, %300 : vector<2x1xf32>
    %cst_118 = arith.constant 0.000000e+00 : f32
    %302 = vector.broadcast %cst_118 : f32 to vector<2x32xf32>
    %303 = vector.shape_cast %301 : vector<2x1xi1> to vector<2x1xi1>
    %304 = vector.broadcast %303 : vector<2x1xi1> to vector<2x32xi1>
    %305 = arith.select %304, %287, %302 : vector<2x32xi1>, vector<2x32xf32>
    %c0_119 = arith.constant 0 : index
    %c5_120 = arith.constant 5 : index
    %c0_121 = arith.constant 0 : index
    %c0_122 = arith.constant 0 : index
    %306 = vector.load %arg5[%c0_119, %c5_120, %c0_121, %c0_122] : memref<1x8x2x32xf32, #tpu.memory_space<vmem>>, vector<1x1x2x32xf32>
    %307 = vector.shape_cast %306 : vector<1x1x2x32xf32> to vector<2x32xf32>
    %308 = vector.shape_cast %305 : vector<2x32xf32> to vector<1x1x2x32xf32>
    tpu.vector_store %arg5[%c0_119, %c5_120, %c0_121, %c0_122], %308 {strides = array<i32>} : memref<1x8x2x32xf32, #tpu.memory_space<vmem>>, vector<1x1x2x32xf32>,
    %c0_123 = arith.constant 0 : index
    %c6 = arith.constant 6 : index
    %c0_124 = arith.constant 0 : index
    %c0_125 = arith.constant 0 : index
    %309 = vector.load %arg3[%c0_123, %c6, %c0_124, %c0_125] : memref<1x8x2x128xf32, #tpu.memory_space<vmem>>, vector<1x1x2x128xf32>
    %310 = vector.shape_cast %309 : vector<1x1x2x128xf32> to vector<2x128xf32>
    %cst_126 = arith.constant dense<0.000000e+00> : vector<2x128xf32>
    %311 = tpu.matmul %294, %8, %cst_126 {dimension_numbers = #tpu.dot_dimension_numbers<[1], [0], [0], [1], [0, 0, 1, 1], [], []>} : vector<2x32xf32>, vector<32x128xf32>, vector<2x128xf32> -> vector<2x128xf32>
    %312 = arith.addf %310, %311 : vector<2x128xf32>
    %313 = vector.extract_strided_slice %312 {offsets = [0, 0], sizes = [2, 32], strides = [1, 1]} : vector<2x128xf32> to vector<2x32xf32>
    %314 = arith.negf %313 : vector<2x32xf32>
    %315 = math.exp %314 : vector<2x32xf32>
    %cst_127 = arith.constant 1.000000e+00 : f32
    %316 = vector.broadcast %cst_127 : f32 to vector<2x32xf32>
    %317 = arith.addf %316, %315 : vector<2x32xf32>
    %318 = arith.divf %316, %317 : vector<2x32xf32>
    %319 = vector.extract_strided_slice %312 {offsets = [0, 32], sizes = [2, 32], strides = [1, 1]} : vector<2x128xf32> to vector<2x32xf32>
    %320 = arith.negf %319 : vector<2x32xf32>
    %321 = math.exp %320 : vector<2x32xf32>
    %cst_128 = arith.constant 1.000000e+00 : f32
    %322 = vector.broadcast %cst_128 : f32 to vector<2x32xf32>
    %323 = arith.addf %322, %321 : vector<2x32xf32>
    %324 = arith.divf %322, %323 : vector<2x32xf32>
    %325 = vector.extract_strided_slice %312 {offsets = [0, 64], sizes = [2, 32], strides = [1, 1]} : vector<2x128xf32> to vector<2x32xf32>
    %326 = math.tanh %325 : vector<2x32xf32>
    %327 = vector.extract_strided_slice %312 {offsets = [0, 96], sizes = [2, 32], strides = [1, 1]} : vector<2x128xf32> to vector<2x32xf32>
    %328 = arith.negf %327 : vector<2x32xf32>
    %329 = math.exp %328 : vector<2x32xf32>
    %cst_129 = arith.constant 1.000000e+00 : f32
    %330 = vector.broadcast %cst_129 : f32 to vector<2x32xf32>
    %331 = arith.addf %330, %329 : vector<2x32xf32>
    %332 = arith.divf %330, %331 : vector<2x32xf32>
    %333 = arith.mulf %324, %299 : vector<2x32xf32>
    %334 = arith.mulf %318, %326 : vector<2x32xf32>
    %335 = arith.addf %333, %334 : vector<2x32xf32>
    %336 = math.tanh %335 : vector<2x32xf32>
    %337 = arith.mulf %332, %336 : vector<2x32xf32>
    %c0_130 = arith.constant 0 : index
    %c6_131 = arith.constant 6 : index
    %c0_132 = arith.constant 0 : index
    %c0_133 = arith.constant 0 : index
    %338 = vector.load %arg2[%c0_130, %c6_131, %c0_132, %c0_133] : memref<1x8x2x1xf32, #tpu.memory_space<vmem>>, vector<1x1x2x1xf32>
    %339 = vector.shape_cast %338 : vector<1x1x2x1xf32> to vector<2x1xf32>
    %cst_134 = arith.constant 0.000000e+00 : f32
    %340 = vector.broadcast %cst_134 : f32 to vector<2x1xf32>
    %341 = arith.cmpf ogt, %339, %340 : vector<2x1xf32>
    %342 = vector.shape_cast %341 : vector<2x1xi1> to vector<2x1xi1>
    %343 = vector.broadcast %342 : vector<2x1xi1> to vector<2x32xi1>
    %344 = arith.select %343, %337, %294 : vector<2x32xi1>, vector<2x32xf32>
    %cst_135 = arith.constant 0.000000e+00 : f32
    %345 = vector.broadcast %cst_135 : f32 to vector<2x1xf32>
    %346 = arith.cmpf ogt, %339, %345 : vector<2x1xf32>
    %347 = vector.shape_cast %346 : vector<2x1xi1> to vector<2x1xi1>
    %348 = vector.broadcast %347 : vector<2x1xi1> to vector<2x32xi1>
    %349 = arith.select %348, %335, %299 : vector<2x32xi1>, vector<2x32xf32>
    %cst_136 = arith.constant 0.000000e+00 : f32
    %350 = vector.broadcast %cst_136 : f32 to vector<2x1xf32>
    %351 = arith.cmpf ogt, %339, %350 : vector<2x1xf32>
    %cst_137 = arith.constant 0.000000e+00 : f32
    %352 = vector.broadcast %cst_137 : f32 to vector<2x32xf32>
    %353 = vector.shape_cast %351 : vector<2x1xi1> to vector<2x1xi1>
    %354 = vector.broadcast %353 : vector<2x1xi1> to vector<2x32xi1>
    %355 = arith.select %354, %337, %352 : vector<2x32xi1>, vector<2x32xf32>
    %c0_138 = arith.constant 0 : index
    %c6_139 = arith.constant 6 : index
    %c0_140 = arith.constant 0 : index
    %c0_141 = arith.constant 0 : index
    %356 = vector.load %arg5[%c0_138, %c6_139, %c0_140, %c0_141] : memref<1x8x2x32xf32, #tpu.memory_space<vmem>>, vector<1x1x2x32xf32>
    %357 = vector.shape_cast %356 : vector<1x1x2x32xf32> to vector<2x32xf32>
    %358 = vector.shape_cast %355 : vector<2x32xf32> to vector<1x1x2x32xf32>
    tpu.vector_store %arg5[%c0_138, %c6_139, %c0_140, %c0_141], %358 {strides = array<i32>} : memref<1x8x2x32xf32, #tpu.memory_space<vmem>>, vector<1x1x2x32xf32>,
    %c0_142 = arith.constant 0 : index
    %c7 = arith.constant 7 : index
    %c0_143 = arith.constant 0 : index
    %c0_144 = arith.constant 0 : index
    %359 = vector.load %arg3[%c0_142, %c7, %c0_143, %c0_144] : memref<1x8x2x128xf32, #tpu.memory_space<vmem>>, vector<1x1x2x128xf32>
    %360 = vector.shape_cast %359 : vector<1x1x2x128xf32> to vector<2x128xf32>
    %cst_145 = arith.constant dense<0.000000e+00> : vector<2x128xf32>
    %361 = tpu.matmul %344, %8, %cst_145 {dimension_numbers = #tpu.dot_dimension_numbers<[1], [0], [0], [1], [0, 0, 1, 1], [], []>} : vector<2x32xf32>, vector<32x128xf32>, vector<2x128xf32> -> vector<2x128xf32>
    %362 = arith.addf %360, %361 : vector<2x128xf32>
    %363 = vector.extract_strided_slice %362 {offsets = [0, 0], sizes = [2, 32], strides = [1, 1]} : vector<2x128xf32> to vector<2x32xf32>
    %364 = arith.negf %363 : vector<2x32xf32>
    %365 = math.exp %364 : vector<2x32xf32>
    %cst_146 = arith.constant 1.000000e+00 : f32
    %366 = vector.broadcast %cst_146 : f32 to vector<2x32xf32>
    %367 = arith.addf %366, %365 : vector<2x32xf32>
    %368 = arith.divf %366, %367 : vector<2x32xf32>
    %369 = vector.extract_strided_slice %362 {offsets = [0, 32], sizes = [2, 32], strides = [1, 1]} : vector<2x128xf32> to vector<2x32xf32>
    %370 = arith.negf %369 : vector<2x32xf32>
    %371 = math.exp %370 : vector<2x32xf32>
    %cst_147 = arith.constant 1.000000e+00 : f32
    %372 = vector.broadcast %cst_147 : f32 to vector<2x32xf32>
    %373 = arith.addf %372, %371 : vector<2x32xf32>
    %374 = arith.divf %372, %373 : vector<2x32xf32>
    %375 = vector.extract_strided_slice %362 {offsets = [0, 64], sizes = [2, 32], strides = [1, 1]} : vector<2x128xf32> to vector<2x32xf32>
    %376 = math.tanh %375 : vector<2x32xf32>
    %377 = vector.extract_strided_slice %362 {offsets = [0, 96], sizes = [2, 32], strides = [1, 1]} : vector<2x128xf32> to vector<2x32xf32>
    %378 = arith.negf %377 : vector<2x32xf32>
    %379 = math.exp %378 : vector<2x32xf32>
    %cst_148 = arith.constant 1.000000e+00 : f32
    %380 = vector.broadcast %cst_148 : f32 to vector<2x32xf32>
    %381 = arith.addf %380, %379 : vector<2x32xf32>
    %382 = arith.divf %380, %381 : vector<2x32xf32>
    %383 = arith.mulf %374, %349 : vector<2x32xf32>
    %384 = arith.mulf %368, %376 : vector<2x32xf32>
    %385 = arith.addf %383, %384 : vector<2x32xf32>
    %386 = math.tanh %385 : vector<2x32xf32>
    %387 = arith.mulf %382, %386 : vector<2x32xf32>
    %c0_149 = arith.constant 0 : index
    %c7_150 = arith.constant 7 : index
    %c0_151 = arith.constant 0 : index
    %c0_152 = arith.constant 0 : index
    %388 = vector.load %arg2[%c0_149, %c7_150, %c0_151, %c0_152] : memref<1x8x2x1xf32, #tpu.memory_space<vmem>>, vector<1x1x2x1xf32>
    %389 = vector.shape_cast %388 : vector<1x1x2x1xf32> to vector<2x1xf32>
    %cst_153 = arith.constant 0.000000e+00 : f32
    %390 = vector.broadcast %cst_153 : f32 to vector<2x1xf32>
    %391 = arith.cmpf ogt, %389, %390 : vector<2x1xf32>
    %392 = vector.shape_cast %391 : vector<2x1xi1> to vector<2x1xi1>
    %393 = vector.broadcast %392 : vector<2x1xi1> to vector<2x32xi1>
    %394 = arith.select %393, %387, %344 : vector<2x32xi1>, vector<2x32xf32>
    %cst_154 = arith.constant 0.000000e+00 : f32
    %395 = vector.broadcast %cst_154 : f32 to vector<2x1xf32>
    %396 = arith.cmpf ogt, %389, %395 : vector<2x1xf32>
    %397 = vector.shape_cast %396 : vector<2x1xi1> to vector<2x1xi1>
    %398 = vector.broadcast %397 : vector<2x1xi1> to vector<2x32xi1>
    %399 = arith.select %398, %385, %349 : vector<2x32xi1>, vector<2x32xf32>
    %cst_155 = arith.constant 0.000000e+00 : f32
    %400 = vector.broadcast %cst_155 : f32 to vector<2x1xf32>
    %401 = arith.cmpf ogt, %389, %400 : vector<2x1xf32>
    %cst_156 = arith.constant 0.000000e+00 : f32
    %402 = vector.broadcast %cst_156 : f32 to vector<2x32xf32>
    %403 = vector.shape_cast %401 : vector<2x1xi1> to vector<2x1xi1>
    %404 = vector.broadcast %403 : vector<2x1xi1> to vector<2x32xi1>
    %405 = arith.select %404, %387, %402 : vector<2x32xi1>, vector<2x32xf32>
    %c0_157 = arith.constant 0 : index
    %c7_158 = arith.constant 7 : index
    %c0_159 = arith.constant 0 : index
    %c0_160 = arith.constant 0 : index
    %406 = vector.load %arg5[%c0_157, %c7_158, %c0_159, %c0_160] : memref<1x8x2x32xf32, #tpu.memory_space<vmem>>, vector<1x1x2x32xf32>
    %407 = vector.shape_cast %406 : vector<1x1x2x32xf32> to vector<2x32xf32>
    %408 = vector.shape_cast %405 : vector<2x32xf32> to vector<1x1x2x32xf32>
    tpu.vector_store %arg5[%c0_157, %c7_158, %c0_159, %c0_160], %408 {strides = array<i32>} : memref<1x8x2x32xf32, #tpu.memory_space<vmem>>, vector<1x1x2x32xf32>,
    %c0_161 = arith.constant 0 : index
    %c0_162 = arith.constant 0 : index
    %c0_163 = arith.constant 0 : index
    %409 = vector.load %arg6[%c0_161, %c0_162, %c0_163] : memref<1x2x32xf32, #tpu.memory_space<vmem>>, vector<1x2x32xf32>
    %410 = vector.shape_cast %409 : vector<1x2x32xf32> to vector<2x32xf32>
    %411 = vector.shape_cast %394 : vector<2x32xf32> to vector<1x2x32xf32>
    tpu.vector_store %arg6[%c0_161, %c0_162, %c0_163], %411 {strides = array<i32>} : memref<1x2x32xf32, #tpu.memory_space<vmem>>, vector<1x2x32xf32>,
    %c0_164 = arith.constant 0 : index
    %c0_165 = arith.constant 0 : index
    %c0_166 = arith.constant 0 : index
    %412 = vector.load %arg7[%c0_164, %c0_165, %c0_166] : memref<1x2x32xf32, #tpu.memory_space<vmem>>, vector<1x2x32xf32>
    %413 = vector.shape_cast %412 : vector<1x2x32xf32> to vector<2x32xf32>
    %414 = vector.shape_cast %399 : vector<2x32xf32> to vector<1x2x32xf32>
    tpu.vector_store %arg7[%c0_164, %c0_165, %c0_166], %414 {strides = array<i32>} : memref<1x2x32xf32, #tpu.memory_space<vmem>>, vector<1x2x32xf32>,
    return
  }
  func.func @transform_0(%arg0: i32, %arg1: i32) -> (i32, i32, i32, i32) {
    %c0_i32 = arith.constant 0 : i32
    %c0_i32_0 = arith.constant 0 : i32
    %c0_i32_1 = arith.constant 0 : i32
    return %arg0, %arg1, %c0_i32, %c0_i32_0 : i32, i32, i32, i32
  }
  func.func @transform_1(%arg0: i32, %arg1: i32) -> (i32, i32, i32, i32) {
    %c0_i32 = arith.constant 0 : i32
    %c0_i32_0 = arith.constant 0 : i32
    %c0_i32_1 = arith.constant 0 : i32
    return %arg0, %arg1, %c0_i32, %c0_i32_0 : i32, i32, i32, i32
  }
  func.func @transform_2(%arg0: i32, %arg1: i32) -> (i32, i32, i32) {
    %c0_i32 = arith.constant 0 : i32
    %c0_i32_0 = arith.constant 0 : i32
    %c0_i32_1 = arith.constant 0 : i32
    return %arg0, %c0_i32, %c0_i32_0 : i32, i32, i32
  }
  func.func @transform_3(%arg0: i32, %arg1: i32) -> (i32, i32, i32, i32) {
    %c0_i32 = arith.constant 0 : i32
    %c0_i32_0 = arith.constant 0 : i32
    %c0_i32_1 = arith.constant 0 : i32
    return %arg0, %arg1, %c0_i32, %c0_i32_0 : i32, i32, i32, i32
  }
  func.func @transform_4(%arg0: i32, %arg1: i32) -> (i32, i32, i32) {
    %c0_i32 = arith.constant 0 : i32
    %c0_i32_0 = arith.constant 0 : i32
    %c0_i32_1 = arith.constant 0 : i32
    return %arg0, %c0_i32, %c0_i32_0 : i32, i32, i32
  }
  func.func @transform_5(%arg0: i32, %arg1: i32) -> (i32, i32, i32) {
    %c0_i32 = arith.constant 0 : i32
    %c0_i32_0 = arith.constant 0 : i32
    %c0_i32_1 = arith.constant 0 : i32
    return %arg0, %c0_i32, %c0_i32_0 : i32, i32, i32
  }
}

</mosaic_0001>

<bundles_post_ra>
// kernel: tpu_custom_call.1
= control target key start
LH: loop header
LB: loop body
LE: loop exit
PB: predicated region body
PF: predicated region fallthrough
CT: control target
= control target key end

     0   :  { %s2617_s0 = inlined_call_operand.vmem [shape: f32[2,8,2,1], index: 0, kind: input, shape index: {}]   ;;  %s2618_s1 = inlined_call_operand.vmem [shape: f32[2,8,2,128], index: 1, kind: input, shape index: {}]   ;;  %s2619_s2 = inlined_call_operand.hbm [shape: f32[2,32,128], index: 2, kind: input, shape index: {}]   ;;  %s2620_s3 = inlined_call_operand.hbm [shape: f32[2,8,2,32], index: 3, kind: output, shape index: {0}]   ;;  %s2621_s4 = inlined_call_operand.hbm [shape: f32[2,2,32], index: 4, kind: output, shape index: {1}]   ;;  %s2622_s5 = inlined_call_operand.hbm [shape: f32[2,2,32], index: 5, kind: output, shape index: {2}]  }
   0x1   :  { %2625 = sst [smem:[#allocation12_spill]] %s2617_s0 }
   0x2   :  { %2626 = sst [smem:[#allocation13_spill]] %s2618_s1 }
   0x3   :  { %11 = vsyncpa [#allocation3], 0 }
   0x4   :  { %13 = vsyncpa [#allocation3 + $0x1], 0 }
   0x5   :  { %14 = vsyncpa [#allocation4], 0 }
   0x6   :  { %16 = vsyncpa [#allocation4 + $0x1], 0 }
   0x7   :  { %17 = vsyncpa [#allocation7], 0 }
   0x8   :  { %19 = vsyncpa [#allocation7 + $0x1], 0  ;;  %s2110_s18 = smov 0   ;;  %s2112_s19 = smov 0  }
   0x9   :  { %s2114_s20 = smov 0   ;;  %s2116_s21 = smov 0  }
   0xa   :  { %s2118_s22 = smov 0   ;;  %s2120_s23 = smov 0  }
   0xb LB: > { %s2141_s24 = sadd.s32 4294967295, %s2065_s23   ;;  %s2623_s25 = sadd.s32 4294967294, %s2065_s23   ;;  %s2065_s23 = sphi %s2120_s23, %s25_s23   ;;  %s2061_s22 = sphi %s2118_s22, %s2641_s22   ;;  %s2057_s21 = sphi %s2116_s21, %s2640_s21   ;;  %s2053_s20 = sphi %s2114_s20, %s2639_s20   ;;  %s2049_s19 = sphi %s2112_s19, %s2638_s19   ;;  %s2045_s18 = sphi %s2110_s18, %s2637_s18  }
   0xc   : > { %s37_s26 = sadd.s32 1, %s2061_s22  ;;  %s100_s27 = sadd.s32 1, %s2053_s20 }
   0xd   : > { %p39_p0 = scmp.ge.s32.totalorder %s37_s26, 2  ;;  %p107_p1 = scmp.ne.s32.totalorder %s2053_s20, %s2049_s19 }
   0xe   : > { %p108_p2 = scmp.eq.s32.totalorder %s2065_s23, 0  ;;  %p113_p3 = scmp.ne.s32.totalorder %s2049_s19, %s2045_s18 }
   0xf   : > { %s2643_s26 = smov (%p39_p0, %s37_s26), 0  ;;  %p114_p5 = scmp.eq.s32.totalorder %s2141_s24, 0 }
  0x10   : > { %p2153_p4 = por %p108_p2, %p107_p1  ;;  %s97_s29 = ssub.s32 %s2061_s22, %s2643_s26 }
  0x11   : > { %p139_p6 = scmp.eq.s32.totalorder %s2141_s24, 1  ;;  %p98_p7 = scmp.eq.s32.totalorder %s97_s29, 0 }
  0x12   : > { %p2161_p8 = por %p114_p5, %p113_p3  ;;  %p145_p10 = scmp.eq.s32.totalorder %s2623_s25, 1 }
  0x13   : > { %p2165_p9 = por %p139_p6, %p107_p1  ;;  %p1776_p13 = scmp.lt.s32.totalorder %s2065_s23, 2 }
  0x14   : > { %s2172_s7 = scalar_select %p98_p7, %s2053_s20, %s100_s27  }
  0x15   : > { %p2174_p11 = por %p145_p10, %p113_p3  ;;  %s243_s9 = sand.u32 1, %s2053_s20  }
  0x16   : > { %s1564_s10 = sshll.u32 %s243_s9, 5  ;;  %s1622_s11 = sshll.u32 %s2061_s22, 9 }
  0x17   : > { %s253_s14 = scalar_lea.hbm %s2619_s2, %s1622_s11  ;;  %s247_s15 = scalar_lea.vmem [#allocation2], %s1564_s10 }
  0x18   : > { %s254_s16 = sshll.u32 %s247_s15, 4  ;;  %p2187_p0 = pnand %p1776_p13, %p2153_p4  ;;  %s255_s16 = int_to_ptr.vmem [resolvable:$true] %s254_s16 }
  0x19   : > { %p1567_p1 = scmp.ge.s32.totalorder %s2065_s23, 1  ;;  %s244_s27 = scalar_lea.sflag [#allocation3], %s243_s9 }
  0x1a   : > { %p1903_p2 = pneg %p2187_p0  ;;  %s1914_s29 = scalar_lea.vmem %s255_s16, 512 }
  0x1b   : > { %p1915_p3 = scmp.ne.s32.totalorder %s255_s16, %s1914_s29  ;;  %s2067_s25 = smov [#allocation2]  }
  0x1c   : > { %s1919_s12 = sshll.u32 %s2067_s25, 4  ;;  %s1920_s12 = int_to_ptr.vmem [resolvable:$false] %s1919_s12 }
  0x1d   : > { %p1917_p5 = pnand %p1915_p3, %p1903_p2  ;;  %s1921_s10 = scalar_lea.vmem %s1920_s12, 1024 }
  0x1e   : > { %p1922_p7 = scmp.lt.s32.totalorder %s255_s16, %s1920_s12  ;;  %p1923_p10 = scmp.lt.s32.totalorder %s1921_s10, %s1914_s29 }
  0x1f   : > { %p1918_p6 = pneg %p1917_p5 }
  0x20   : > { %p1924_p12 = por %p1923_p10, %p1922_p7 }
  0x22   : > { %p1925_p4 = pnand %p1924_p12, %p1918_p6 }
  0x24   : > { %1928 = shalt.err (!%p1925_p4)
}
  0x25   : > { %s2068_s28 = smov 128   ;;  %s2069_s9 = smov 8  }
  0x26   : > { %1765 = dma.hbm_to_vmem [thread:$0]  (!%p2187_p0), %s253_s14, 512, %s255_s16, %s244_s27, %s2068_s28, %s2068_s28, %s2069_s9  }
  0x27   : > { %p262_p13 = scmp.lt.s32.totalorder %s2065_s23, 3 }
  0x29   : > { %p263_p2 = pnand %p1567_p1, %p262_p13 }
  0x2a   : > { %s2200_s25 = sand.u32 (!%p263_p2), 1, %s2049_s19  }
  0x2b   : > { %266 = sbr.rel (%p263_p2) target bundleno = 5636 (0x1604), region = 32  ;;  %s1568_s11 = sshll.u32 (!%p263_p2), %s2200_s25, 5 }
  0x2c   : > { %s269_s13 = scalar_lea.sflag (!%p263_p2), [#allocation3], %s2200_s25  ;;  %s272_s15 = scalar_lea.vmem (!%p263_p2), [#allocation2], %s1568_s11 }
  0x30   : > { %2032 = dma.done.wait (%p2161_p8), %s269_s13, 512  }
  0x31   : > { %2034 = vsyncadd (%p2161_p8), %s269_s13, 4294966784  ;;  %s1570_s14 = sshll.u32 %s2200_s25, 1  ;;  %vm352_vm0 = vcmask 254976   ;;  %v2070_v0 = vmov 0.0   ;;  %vm2071_vm1 = vmmov 0   ;;  %v2222_v1 = vld [vmem:[%s272_s15 + $0x18] sm:$0xff] }
  0x32   : > { %1666 = vmatprep.subr.mxu0 %v2070_v0  ;;  %1674 = vmatprep.mubr.msk.f32.mxu0 %vm2071_vm1, %v2070_v0  ;;  %s2214_s16 = scalar_lea.vmem [#allocation6], %s1570_s14  ;;  %v2224_v2 = vld [vmem:[%s272_s15 + $0x10] sm:$0xff]  ;;  %v2229_v3 = vld [vmem:[%s272_s15 + $0x8] sm:$0xff]  ;;  %v2235_v4 = vld [vmem:[%s272_s15] sm:$0xff]  ;;  %vm362_vm2 = vcmask 261120   ;;  %s2260_s30 = scalar_lea.vmem [#allocation8], %s1570_s14 }
  0x33   : > { %353 = vst.msk [vmem:[%s2214_s16] sm:$0x3] %vm352_vm0, %v2070_v0  ;;  %1677 = vmatprep.subr.mxu1 %v2070_v0  ;;  %1685 = vmatprep.mubr.msk.f32.mxu1 %vm2071_vm1, %v2070_v0  ;;  %354 = vst.msk [vmem:[%s2260_s30] sm:$0x3] %vm352_vm0, %v2070_v0  ;;  %p328_p8 = scmp.lt.s32.totalorder %s2057_s21, 1  ;;  %s2632_s1 = sld [smem:[#allocation13_spill]] }
  0x34   : > { %1667 = vmatpush3.msra.mxu0 %v2222_v1  ;;  %1678 = vmatpush3.msra.mxu1 %v2222_v1  ;;  %v2072_v10 = vmov 0   ;;  %s2073_s28 = smov 64   ;;  %s2624_s9 = smov 32  }
  0x35   : > { %1668 = vmatprep.subr.mxu0 %v2070_v0  ;;  %1679 = vmatprep.subr.mxu1 %v2070_v0  ;;  %s329_s17 = scalar_select %p328_p8, %s2057_s21, 1 }
  0x36   : > { %1669 = vmatpush3.msra.mxu0 %v2224_v2  ;;  %1680 = vmatpush3.msra.mxu1 %v2224_v2  ;;  %s2633_s0 = sld [smem:[#allocation12_spill]]  ;;  %s2075_s14 = smov 96  }
  0x37   : > { %1670 = vmatprep.subr.mxu0 %v2070_v0  ;;  %1681 = vmatprep.subr.mxu1 %v2070_v0  ;;  %s1623_s27 = sshll.u32 %s329_s17, 4  ;;  %s1569_s17 = sshll.u32 %s2200_s25, 4 }
  0x38   : > { %1671 = vmatpush3.msra.mxu0 %v2229_v3  ;;  %1682 = vmatpush3.msra.mxu1 %v2229_v3  ;;  %s1332_s12 = sand.u32 1, %s2141_s24   ;;  %s1382_s11 = sshll.u32 %s2260_s30, 4  ;;  %s2512_s11 = int_to_ptr.vmem [resolvable:$true] %s1382_s11 }
  0x39   : > { %1672 = vmatprep.subr.mxu0 %v2070_v0  ;;  %1683 = vmatprep.subr.mxu1 %v2070_v0  ;;  %s2270_s10 = scalar_lea.vmem %s2632_s1, %s1623_s27 }
  0x3a   : > { %v355_v5 = vld [vmem:[%s2214_s16] sm:$0x3]  ;;  %1673 = vmatpush3.msra.mxu0 %v2235_v4  ;;  %1684 = vmatpush3.msra.mxu1 %v2235_v4  ;;  %v356_v12 = vld [vmem:[%s2260_s30] sm:$0x3] }
  0x3b   : > { %1675 = vmatmul.mubr.msk.f32.vlgmr.msra.gmra.mxu0 %vm362_vm2, %v355_v5  ;;  %1688 = vmatprep.subr.mxu0 %v2070_v0  ;;  %v361_v6 = vld [vmem:[%s2270_s10] sm:$0x3]  ;;  %v1578_v32 = vld [vmem:[%s2270_s10 + $0x2] sm:$0x3]  ;;  %v1583_v55 = vld [vmem:[%s2270_s10 + $0x4] sm:$0x3] }
  0x3c   : > { %1689 = vmatpush3.msra.mxu0 %v2222_v1  ;;  %1696 = vmatprep.mubr.msk.f32.mxu0 %vm2071_vm1, %v2070_v0  ;;  %s2281_s15 = scalar_lea.vmem %s2633_s0, %s1623_s27  ;;  %s2455_s27 = scalar_lea.vmem [#allocation5], %s1569_s17 }
  0x3d   : > { %1690 = vmatprep.subr.mxu0 %v2070_v0  ;;  %1699 = vmatprep.subr.mxu1 %v2070_v0  ;;  %v465_v16 = vld [vmem:[%s2281_s15] sm:$0x3]  ;;  %v1581_v36 = vld [vmem:[%s2281_s15 + $0x2] sm:$0x3]  ;;  %v1586_v59 = vld [vmem:[%s2281_s15 + $0x4] sm:$0x3] }
  0x3e   : > { %1691 = vmatpush3.msra.mxu0 %v2224_v2  ;;  %1835 = vset.pattern.permute.xlu1 %v2072_v10  ;;  %vm466_vm3 = vcmp.gt.f32.partialorder %v465_v16, 0.0  ;;  %vm588_vm5 = vcmp.gt.f32.partialorder %v1581_v36, 0.0  ;;  %vm707_vm7 = vcmp.gt.f32.partialorder %v1586_v59, 0.0  ;;  %s1353_s29 = sshll.u32 %s2455_s27, 4  ;;  %s1625_s17 = sshll.u32 %s2057_s21, 8  ;;  %s2495_s29 = int_to_ptr.vmem [resolvable:$true] %s1353_s29 }
  0x3f   : > { %1692 = vmatprep.subr.mxu0 %v2070_v0  ;;  %1836 = vset.pattern.permute.xlu0 %v2072_v10  ;;  %v467_v20 = vsel %vm466_vm3, 1, %v2072_v10  ;;  %v589_v38 = vsel %vm588_vm5, 1, %v2072_v10  ;;  %v708_v61 = vsel %vm707_vm7, 1, %v2072_v10  ;;  %s2076_s0 = smov [#allocation6]  }
  0x40   : > { %1693 = vmatpush3.msra.mxu0 %v2229_v3 }
  0x41   : > { %1694 = vmatprep.subr.mxu0 %v2070_v0 }
  0x42   : > { %1695 = vmatpush3.msra.mxu0 %v2235_v4 }
  0x43   : > { %1710 = vmatprep.subr.mxu0 %v2070_v0 }
  0xfb   : > { %v432_v7 = vpop.f32.mrf.mxu0 }
  0xfc   : > { %v436_v8 = vadd.f32 %v432_v7, %v361_v6 }
  0xfd   : > { %v1676_v9 = vpop.f32.mrf.mxu0 }
  0xfe   : > { %1837 = vtanh.f32 %v436_v8  ;;  %v1577_v13 = vmul.f32 -1.442695, %v436_v8 }
 0x100   : > { %1839 = vpow2.f32 %v1577_v13 }
 0x10b   : > { %v1838_v11 = vpop.eup %1837 }
 0x10c   : > { %450 = vrot.lane.b32.xlu0 %v1838_v11, %s2073_s28 }
 0x10d   : > { %v1840_v14 = vpop.eup %1839 }
 0x10e   : > { %v440_v15 = vadd.f32 1.0, %v1840_v14 }
 0x110   : > { %445 = vrot.lane.b32.xlu0 %v356_v12, %s2624_s9  ;;  %1841 = vrcp.f32 %v440_v15 }
 0x11d   : > { %v1842_v17 = vpop.eup %1841 }
 0x17e   : > { %v451_v18 = vpop.permute.xlu0 %450 }
 0x17f   : > { %v453_v19 = vmul.f32 %v1842_v17, %v451_v18 }
 0x181   : > { %455 = vrot.lane.b32.xlu1 %v453_v19, %s2624_s9 }
 0x182   : > { %v446_v21 = vpop.permute.xlu0 %445 }
 0x183   : > { %v448_v22 = vmul.f32 %v1842_v17, %v446_v21 }
 0x185   : > { %469 = vperm.xlu1 %1835, %v467_v20   ;;  %v1588_v20 = vld [vmem:[%s2270_s10 + $0x6] sm:$0x3] }
 0x189   : > { %472 = vrot.lane.b32.xlu1 %v355_v5, %s2075_s14 }
 0x1f3   : > { %v456_v23 = vpop.permute.xlu1 %455 }
 0x1f4   : > { %v458_v24 = vadd.f32 %v456_v23, %v448_v22 }
 0x1f6   : > { %1843 = vtanh.f32 %v458_v24 }
 0x200   : > { %v2288_v26 = vpop.permute.xlu1 %469 }
 0x201   : > { %vm471_vm4 = vcmp.eq.s32.totalorder %v2288_v26, 1 }
 0x202   : > { %v476_v45 = vsel %vm471_vm4, %v458_v24, %v446_v21  ;;  %v1591_v24 = vld [vmem:[%s2281_s15 + $0x6] sm:$0x3] }
 0x203   : > { %v1844_v25 = vpop.eup %1843  ;;  %vm826_vm9 = vcmp.gt.f32.partialorder %v1591_v24, 0.0 }
 0x204   : > { %461 = vrot.lane.b32.xlu0 %v1844_v25, %s2073_s28  ;;  %v473_v28 = vpop.permute.xlu1 %472 }
 0x276   : > { %v462_v27 = vpop.permute.xlu0 %461 }
 0x277   : > { %v2290_v29 = vmul.f32 %v1842_v17, %v462_v27  ;;  %v827_v27 = vsel %vm826_vm9, 1, %v2072_v10 }
 0x279   : > { %v475_v30 = vsel %vm471_vm4, %v2290_v29, %v473_v28 }
 0x27a   : > { %487 = vrot.lane.b32.xlu0 %v475_v30, %s2624_s9 }
 0x2ec   : > { %v488_v31 = vpop.permute.xlu0 %487 }
 0x2ed   : > { %1686 = vmatmul.mubr.msk.f32.vlgmr.msra.gmra.mxu1 %vm362_vm2, %v488_v31 }
 0x2ee   : > { %1700 = vmatpush3.msra.mxu1 %v2222_v1  ;;  %1707 = vmatprep.mubr.msk.f32.mxu1 %vm2071_vm1, %v2070_v0 }
 0x2ef   : > { %1701 = vmatprep.subr.mxu1 %v2070_v0 }
 0x2f0   : > { %1702 = vmatpush3.msra.mxu1 %v2224_v2 }
 0x2f1   : > { %1703 = vmatprep.subr.mxu1 %v2070_v0 }
 0x2f2   : > { %1704 = vmatpush3.msra.mxu1 %v2229_v3 }
 0x2f3   : > { %1705 = vmatprep.subr.mxu1 %v2070_v0 }
 0x2f4   : > { %1706 = vmatpush3.msra.mxu1 %v2235_v4 }
 0x2f5   : > { %1721 = vmatprep.subr.mxu1 %v2070_v0 }
 0x3ad   : > { %v557_v33 = vpop.f32.mrf.mxu1 }
 0x3ae   : > { %v561_v34 = vadd.f32 %v1578_v32, %v557_v33 }
 0x3af   : > { %v1687_v35 = vpop.f32.mrf.mxu1 }
 0x3b0   : > { %1845 = vtanh.f32 %v561_v34  ;;  %v1580_v39 = vmul.f32 -1.442695, %v561_v34 }
 0x3b2   : > { %1847 = vpow2.f32 %v1580_v39 }
 0x3bd   : > { %v1846_v37 = vpop.eup %1845 }
 0x3be   : > { %571 = vrot.lane.b32.xlu1 %v1846_v37, %s2073_s28 }
 0x3bf   : > { %v1848_v40 = vpop.eup %1847 }
 0x3c0   : > { %v565_v41 = vadd.f32 1.0, %v1848_v40 }
 0x3c2   : > { %591 = vperm.xlu1 %1835, %v589_v38   ;;  %1849 = vrcp.f32 %v565_v41 }
 0x3cf   : > { %v1850_v42 = vpop.eup %1849 }
 0x3d0   : > { %v569_v46 = vmul.f32 %v1850_v42, %v476_v45 }
 0x430   : > { %v572_v43 = vpop.permute.xlu1 %571 }
 0x431   : > { %v574_v44 = vmul.f32 %v1850_v42, %v572_v43 }
 0x433   : > { %576 = vrot.lane.b32.xlu0 %v574_v44, %s2624_s9 }
 0x43d   : > { %v2316_v50 = vpop.permute.xlu1 %591 }
 0x43e   : > { %vm593_vm6 = vcmp.eq.s32.totalorder %v2316_v50, 1 }
 0x4a5   : > { %v577_v47 = vpop.permute.xlu0 %576 }
 0x4a6   : > { %v579_v48 = vadd.f32 %v577_v47, %v569_v46 }
 0x4a8   : > { %1851 = vtanh.f32 %v579_v48  ;;  %v595_v9 = vsel %vm593_vm6, %v579_v48, %v476_v45  ;;  %v1593_v45 = vld [vmem:[%s2270_s10 + $0x8] sm:$0x3] }
 0x4b5   : > { %v1852_v49 = vpop.eup %1851 }
 0x4b6   : > { %582 = vrot.lane.b32.xlu0 %v1852_v49, %s2073_s28  ;;  %v1596_v49 = vld [vmem:[%s2281_s15 + $0x8] sm:$0x3] }
 0x4b7   : > { %vm945_vm11 = vcmp.gt.f32.partialorder %v1596_v49, 0.0 }
 0x528   : > { %v583_v51 = vpop.permute.xlu0 %582 }
 0x529   : > { %v2318_v52 = vmul.f32 %v1850_v42, %v583_v51 }
 0x52b   : > { %v594_v53 = vsel %vm593_vm6, %v2318_v52, %v475_v30 }
 0x52c   : > { %606 = vrot.lane.b32.xlu1 %v594_v53, %s2624_s9 }
 0x59e   : > { %v607_v54 = vpop.permute.xlu1 %606 }
 0x59f   : > { %1697 = vmatmul.mubr.msk.f32.vlgmr.msra.gmra.mxu0 %vm362_vm2, %v607_v54 }
 0x5a0   : > { %1711 = vmatpush3.msra.mxu0 %v2222_v1  ;;  %1718 = vmatprep.mubr.msk.f32.mxu0 %vm2071_vm1, %v2070_v0 }
 0x5a1   : > { %1712 = vmatprep.subr.mxu0 %v2070_v0 }
 0x5a2   : > { %1713 = vmatpush3.msra.mxu0 %v2224_v2 }
 0x5a3   : > { %1714 = vmatprep.subr.mxu0 %v2070_v0 }
 0x5a4   : > { %1715 = vmatpush3.msra.mxu0 %v2229_v3 }
 0x5a5   : > { %1716 = vmatprep.subr.mxu0 %v2070_v0 }
 0x5a6   : > { %1717 = vmatpush3.msra.mxu0 %v2235_v4 }
 0x5a7   : > { %1732 = vmatprep.subr.mxu0 %v2070_v0 }
 0x65f   : > { %v676_v56 = vpop.f32.mrf.mxu0 }
 0x660   : > { %v680_v57 = vadd.f32 %v1583_v55, %v676_v56 }
 0x661   : > { %v1698_v58 = vpop.f32.mrf.mxu0 }
 0x662   : > { %1853 = vtanh.f32 %v680_v57  ;;  %v1585_v62 = vmul.f32 -1.442695, %v680_v57 }
 0x664   : > { %1855 = vpow2.f32 %v1585_v62 }
 0x66f   : > { %v1854_v60 = vpop.eup %1853 }
 0x670   : > { %690 = vrot.lane.b32.xlu0 %v1854_v60, %s2073_s28 }
 0x671   : > { %v1856_v63 = vpop.eup %1855 }
 0x672   : > { %v684_v5 = vadd.f32 1.0, %v1856_v63 }
 0x674   : > { %710 = vperm.xlu0 %1836, %v708_v61   ;;  %1857 = vrcp.f32 %v684_v5 }
 0x681   : > { %v1858_v6 = vpop.eup %1857 }
 0x682   : > { %v688_v11 = vmul.f32 %v1858_v6, %v595_v9 }
 0x6e2   : > { %v691_v7 = vpop.permute.xlu0 %690 }
 0x6e3   : > { %v693_v8 = vmul.f32 %v1858_v6, %v691_v7 }
 0x6e5   : > { %695 = vrot.lane.b32.xlu1 %v693_v8, %s2624_s9 }
 0x6ef   : > { %v2344_v15 = vpop.permute.xlu0 %710 }
 0x6f0   : > { %vm712_vm8 = vcmp.eq.s32.totalorder %v2344_v15, 1 }
 0x757   : > { %v696_v12 = vpop.permute.xlu1 %695 }
 0x758   : > { %v698_v13 = vadd.f32 %v696_v12, %v688_v11  ;;  %v1598_v12 = vld [vmem:[%s2270_s10 + $0xa] sm:$0x3] }
 0x75a   : > { %1859 = vtanh.f32 %v698_v13  ;;  %v714_v35 = vsel %vm712_vm8, %v698_v13, %v595_v9 }
 0x767   : > { %v1860_v14 = vpop.eup %1859 }
 0x768   : > { %701 = vrot.lane.b32.xlu1 %v1860_v14, %s2073_s28 }
 0x7da   : > { %v702_v16 = vpop.permute.xlu1 %701 }
 0x7db   : > { %v2346_v17 = vmul.f32 %v1858_v6, %v702_v16 }
 0x7dd   : > { %v713_v18 = vsel %vm712_vm8, %v2346_v17, %v594_v53  ;;  %v946_v53 = vsel %vm945_vm11, 1, %v2072_v10 }
 0x7de   : > { %725 = vrot.lane.b32.xlu1 %v713_v18, %s2624_s9 }
 0x850   : > { %v726_v19 = vpop.permute.xlu1 %725 }
 0x851   : > { %1708 = vmatmul.mubr.msk.f32.vlgmr.msra.gmra.mxu1 %vm362_vm2, %v726_v19 }
 0x852   : > { %1722 = vmatpush3.msra.mxu1 %v2222_v1  ;;  %1729 = vmatprep.mubr.msk.f32.mxu1 %vm2071_vm1, %v2070_v0 }
 0x853   : > { %1723 = vmatprep.subr.mxu1 %v2070_v0 }
 0x854   : > { %1724 = vmatpush3.msra.mxu1 %v2224_v2 }
 0x855   : > { %1725 = vmatprep.subr.mxu1 %v2070_v0 }
 0x856   : > { %1726 = vmatpush3.msra.mxu1 %v2229_v3 }
 0x857   : > { %1727 = vmatprep.subr.mxu1 %v2070_v0 }
 0x858   : > { %1728 = vmatpush3.msra.mxu1 %v2235_v4 }
 0x859   : > { %1743 = vmatprep.subr.mxu1 %v2070_v0 }
 0x911   : > { %v795_v21 = vpop.f32.mrf.mxu1 }
 0x912   : > { %v799_v22 = vadd.f32 %v1588_v20, %v795_v21 }
 0x913   : > { %v1709_v23 = vpop.f32.mrf.mxu1 }
 0x914   : > { %1861 = vtanh.f32 %v799_v22  ;;  %v1590_v28 = vmul.f32 -1.442695, %v799_v22 }
 0x916   : > { %1863 = vpow2.f32 %v1590_v28 }
 0x921   : > { %v1862_v25 = vpop.eup %1861 }
 0x922   : > { %809 = vrot.lane.b32.xlu0 %v1862_v25, %s2073_s28 }
 0x923   : > { %v1864_v30 = vpop.eup %1863 }
 0x924   : > { %v803_v31 = vadd.f32 1.0, %v1864_v30 }
 0x926   : > { %829 = vperm.xlu0 %1836, %v827_v27   ;;  %1865 = vrcp.f32 %v803_v31 }
 0x933   : > { %v1866_v32 = vpop.eup %1865 }
 0x934   : > { %v807_v36 = vmul.f32 %v1866_v32, %v714_v35 }
 0x994   : > { %v810_v33 = vpop.permute.xlu0 %809 }
 0x995   : > { %v812_v34 = vmul.f32 %v1866_v32, %v810_v33 }
 0x997   : > { %814 = vrot.lane.b32.xlu1 %v812_v34, %s2624_s9  ;;  %v1603_v34 = vld [vmem:[%s2270_s10 + $0xc] sm:$0x3] }
 0x9a1   : > { %v2372_v40 = vpop.permute.xlu0 %829 }
 0x9a2   : > { %vm831_vm10 = vcmp.eq.s32.totalorder %v2372_v40, 1 }
 0xa09   : > { %v815_v37 = vpop.permute.xlu1 %814 }
 0xa0a   : > { %v817_v38 = vadd.f32 %v815_v37, %v807_v36 }
 0xa0c   : > { %1867 = vtanh.f32 %v817_v38  ;;  %v833_v60 = vsel %vm831_vm10, %v817_v38, %v714_v35  ;;  %v1606_v38 = vld [vmem:[%s2281_s15 + $0xc] sm:$0x3] }
 0xa0d   : > { %vm1183_vm15 = vcmp.gt.f32.partialorder %v1606_v38, 0.0 }
 0xa19   : > { %v1868_v39 = vpop.eup %1867 }
 0xa1a   : > { %820 = vrot.lane.b32.xlu1 %v1868_v39, %s2073_s28 }
 0xa8c   : > { %v821_v41 = vpop.permute.xlu1 %820 }
 0xa8d   : > { %v2374_v42 = vmul.f32 %v1866_v32, %v821_v41  ;;  %v1184_v41 = vsel %vm1183_vm15, 1, %v2072_v10 }
 0xa8f   : > { %v832_v43 = vsel %vm831_vm10, %v2374_v42, %v713_v18 }
 0xa90   : > { %844 = vrot.lane.b32.xlu0 %v832_v43, %s2624_s9 }
 0xb02   : > { %v845_v44 = vpop.permute.xlu0 %844 }
 0xb03   : > { %1719 = vmatmul.mubr.msk.f32.vlgmr.msra.gmra.mxu0 %vm362_vm2, %v845_v44 }
 0xb04   : > { %1733 = vmatpush3.msra.mxu0 %v2222_v1  ;;  %1740 = vmatprep.mubr.msk.f32.mxu0 %vm2071_vm1, %v2070_v0 }
 0xb05   : > { %1734 = vmatprep.subr.mxu0 %v2070_v0 }
 0xb06   : > { %1735 = vmatpush3.msra.mxu0 %v2224_v2 }
 0xb07   : > { %1736 = vmatprep.subr.mxu0 %v2070_v0 }
 0xb08   : > { %1737 = vmatpush3.msra.mxu0 %v2229_v3 }
 0xb09   : > { %1738 = vmatprep.subr.mxu0 %v2070_v0 }
 0xb0a   : > { %1739 = vmatpush3.msra.mxu0 %v2235_v4 }
 0xbc3   : > { %v914_v46 = vpop.f32.mrf.mxu0 }
 0xbc4   : > { %v918_v47 = vadd.f32 %v1593_v45, %v914_v46 }
 0xbc5   : > { %v1720_v48 = vpop.f32.mrf.mxu0 }
 0xbc6   : > { %1869 = vtanh.f32 %v918_v47  ;;  %v1595_v54 = vmul.f32 -1.442695, %v918_v47 }
 0xbc8   : > { %1871 = vpow2.f32 %v1595_v54 }
 0xbd3   : > { %v1870_v51 = vpop.eup %1869 }
 0xbd4   : > { %928 = vrot.lane.b32.xlu1 %v1870_v51, %s2073_s28 }
 0xbd5   : > { %v1872_v55 = vpop.eup %1871 }
 0xbd6   : > { %v922_v56 = vadd.f32 1.0, %v1872_v55 }
 0xbd8   : > { %948 = vperm.xlu1 %1835, %v946_v53   ;;  %1873 = vrcp.f32 %v922_v56 }
 0xbe5   : > { %v1874_v57 = vpop.eup %1873 }
 0xbe6   : > { %v926_v61 = vmul.f32 %v1874_v57, %v833_v60 }
 0xc46   : > { %v929_v58 = vpop.permute.xlu1 %928 }
 0xc47   : > { %v931_v59 = vmul.f32 %v1874_v57, %v929_v58 }
 0xc49   : > { %933 = vrot.lane.b32.xlu0 %v931_v59, %s2624_s9 }
 0xc53   : > { %v2399_v6 = vpop.permute.xlu1 %948 }
 0xc54   : > { %vm950_vm12 = vcmp.eq.s32.totalorder %v2399_v6, 1 }
 0xcbb   : > { %v934_v62 = vpop.permute.xlu0 %933 }
 0xcbc   : > { %v936_v63 = vadd.f32 %v934_v62, %v926_v61  ;;  %v1608_v61 = vld [vmem:[%s2270_s10 + $0xe] sm:$0x3]  ;;  %s1618_s10 = sshll.u32 %s2057_s21, 5  ;;  %s2521_s21 = scalar_lea.sflag [#allocation7], %s1332_s12 }
 0xcbd   : > { %s2510_s24 = scalar_lea.hbm %s2622_s5, %s1618_s10 }
 0xcbe   : > { %1875 = vtanh.f32 %v936_v63  ;;  %v952_v22 = vsel %vm950_vm12, %v936_v63, %v833_v60 }
 0xccb   : > { %v1876_v5 = vpop.eup %1875 }
 0xccc   : > { %939 = vrot.lane.b32.xlu0 %v1876_v5, %s2073_s28 }
 0xd3e   : > { %v940_v7 = vpop.permute.xlu0 %939 }
 0xd3f   : > { %v2401_v8 = vmul.f32 %v1874_v57, %v940_v7  ;;  %v1611_v7 = vld [vmem:[%s2281_s15 + $0xe] sm:$0x3] }
 0xd40   : > { %vm1302_vm3 = vcmp.gt.f32.partialorder %v1611_v7, 0.0 }
 0xd41   : > { %v951_v9 = vsel %vm950_vm12, %v2401_v8, %v832_v43 }
 0xd42   : > { %963 = vrot.lane.b32.xlu1 %v951_v9, %s2624_s9 }
 0xdb4   : > { %v964_v11 = vpop.permute.xlu1 %963 }
 0xdb5   : > { %1730 = vmatmul.mubr.msk.f32.vlgmr.msra.gmra.mxu1 %vm362_vm2, %v964_v11  ;;  %v1303_v11 = vsel %vm1302_vm3, 1, %v2072_v10 }
 0xdb6   : > { %1744 = vmatpush3.msra.mxu1 %v2222_v1  ;;  %1751 = vmatprep.mubr.msk.f32.mxu1 %vm2071_vm1, %v2070_v0  ;;  %v1601_v1 = vld [vmem:[%s2281_s15 + $0xa] sm:$0x3]  ;;  %s2519_s15 = scalar_lea.hbm %s2620_s3, %s1625_s17 }
 0xdb7   : > { %1745 = vmatprep.subr.mxu1 %v2070_v0  ;;  %vm1064_vm13 = vcmp.gt.f32.partialorder %v1601_v1, 0.0 }
 0xdb8   : > { %1746 = vmatpush3.msra.mxu1 %v2224_v2  ;;  %v1065_v2 = vsel %vm1064_vm13, 1, %v2072_v10 }
 0xdb9   : > { %1747 = vmatprep.subr.mxu1 %v2070_v0 }
 0xdba   : > { %1748 = vmatpush3.msra.mxu1 %v2229_v3 }
 0xdbb   : > { %1749 = vmatprep.subr.mxu1 %v2070_v0 }
 0xdbc   : > { %1750 = vmatpush3.msra.mxu1 %v2235_v4 }
 0xe75   : > { %v1033_v13 = vpop.f32.mrf.mxu1 }
 0xe76   : > { %v1037_v14 = vadd.f32 %v1598_v12, %v1033_v13  ;;  %v596_v12 = vsel %vm593_vm6, %v2318_v52, 0.0  ;;  %v834_v13 = vsel %vm831_vm10, %v2374_v42, 0.0 }
 0xe77   : > { %v1731_v16 = vpop.f32.mrf.mxu1 }
 0xe78   : > { %1877 = vtanh.f32 %v1037_v14  ;;  %v1600_v19 = vmul.f32 -1.442695, %v1037_v14 }
 0xe7a   : > { %1879 = vpow2.f32 %v1600_v19 }
 0xe85   : > { %v1878_v18 = vpop.eup %1877 }
 0xe86   : > { %1047 = vrot.lane.b32.xlu0 %v1878_v18, %s2073_s28 }
 0xe87   : > { %v1880_v3 = vpop.eup %1879 }
 0xe88   : > { %v1041_v20 = vadd.f32 1.0, %v1880_v3 }
 0xe8a   : > { %1067 = vperm.xlu0 %1836, %v1065_v2   ;;  %1881 = vrcp.f32 %v1041_v20 }
 0xe97   : > { %v1882_v0 = vpop.eup %1881 }
 0xe98   : > { %v1045_v23 = vmul.f32 %v1882_v0, %v952_v22 }
 0xef8   : > { %v1048_v4 = vpop.permute.xlu0 %1047 }
 0xef9   : > { %v1050_v21 = vmul.f32 %v1882_v0, %v1048_v4 }
 0xefb   : > { %1052 = vrot.lane.b32.xlu1 %v1050_v21, %s2624_s9 }
 0xf05   : > { %v1068_v28 = vpop.permute.xlu0 %1067 }
 0xf06   : > { %vm1069_vm14 = vcmp.eq.s32.totalorder %v1068_v28, 1 }
 0xf6d   : > { %v1053_v24 = vpop.permute.xlu1 %1052 }
 0xf6e   : > { %v1055_v25 = vadd.f32 %v1053_v24, %v1045_v23  ;;  %v715_v23 = vsel %vm712_vm8, %v2346_v17, 0.0  ;;  %v953_v24 = vsel %vm950_vm12, %v2401_v8, 0.0 }
 0xf70   : > { %1883 = vtanh.f32 %v1055_v25  ;;  %v1071_v49 = vsel %vm1069_vm14, %v1055_v25, %v952_v22  ;;  %v477_v22 = vsel %vm471_vm4, %v2290_v29, 0.0 }
 0xf7d   : > { %v1884_v27 = vpop.eup %1883 }
 0xf7e   : > { %1058 = vrot.lane.b32.xlu1 %v1884_v27, %s2073_s28 }
 0xff0   : > { %v1059_v30 = vpop.permute.xlu1 %1058 }
 0xff1   : > { %v1061_v31 = vmul.f32 %v1882_v0, %v1059_v30 }
 0xff3   : > { %v1070_v32 = vsel %vm1069_vm14, %v1061_v31, %v951_v9  ;;  %v1072_v14 = vsel %vm1069_vm14, %v1061_v31, 0.0 }
 0xff4   : > { %1082 = vrot.lane.b32.xlu0 %v1070_v32, %s2624_s9 }
0x1066   : > { %v1083_v33 = vpop.permute.xlu0 %1082 }
0x1067   : > { %1741 = vmatmul.mubr.msk.f32.vlgmr.msra.gmra.mxu0 %vm362_vm2, %v1083_v33 }
0x1127   : > { %v1152_v35 = vpop.f32.mrf.mxu0 }
0x1128   : > { %v1156_v36 = vadd.f32 %v1603_v34, %v1152_v35 }
0x1129   : > { %v1742_v37 = vpop.f32.mrf.mxu0 }
0x112a   : > { %1885 = vtanh.f32 %v1156_v36  ;;  %v1605_v43 = vmul.f32 -1.442695, %v1156_v36 }
0x112c   : > { %1887 = vpow2.f32 %v1605_v43 }
0x1137   : > { %v1886_v39 = vpop.eup %1885 }
0x1138   : > { %1166 = vrot.lane.b32.xlu1 %v1886_v39, %s2073_s28 }
0x1139   : > { %v1888_v44 = vpop.eup %1887 }
0x113a   : > { %v1160_v45 = vadd.f32 1.0, %v1888_v44 }
0x113c   : > { %1186 = vperm.xlu1 %1835, %v1184_v41   ;;  %1889 = vrcp.f32 %v1160_v45 }
0x1149   : > { %v1890_v46 = vpop.eup %1889 }
0x114a   : > { %v1164_v51 = vmul.f32 %v1890_v46, %v1071_v49 }
0x11aa   : > { %v1167_v47 = vpop.permute.xlu1 %1166 }
0x11ab   : > { %v1169_v48 = vmul.f32 %v1890_v46, %v1167_v47 }
0x11ad   : > { %1171 = vrot.lane.b32.xlu0 %v1169_v48, %s2624_s9 }
0x11b7   : > { %v1187_v56 = vpop.permute.xlu1 %1186 }
0x11b8   : > { %vm1188_vm1 = vcmp.eq.s32.totalorder %v1187_v56, 1 }
0x121f   : > { %v1172_v53 = vpop.permute.xlu0 %1171 }
0x1220   : > { %v1174_v54 = vadd.f32 %v1172_v53, %v1164_v51 }
0x1222   : > { %1891 = vtanh.f32 %v1174_v54  ;;  %v1190_v3 = vsel %vm1188_vm1, %v1174_v54, %v1071_v49 }
0x122f   : > { %v1892_v55 = vpop.eup %1891 }
0x1230   : > { %1177 = vrot.lane.b32.xlu0 %v1892_v55, %s2073_s28 }
0x12a2   : > { %v1178_v57 = vpop.permute.xlu0 %1177 }
0x12a3   : > { %v1180_v58 = vmul.f32 %v1890_v46, %v1178_v57 }
0x12a5   : > { %v1189_v59 = vsel %vm1188_vm1, %v1180_v58, %v1070_v32  ;;  %v1191_v25 = vsel %vm1188_vm1, %v1180_v58, 0.0 }
0x12a6   : > { %1201 = vrot.lane.b32.xlu1 %v1189_v59, %s2624_s9 }
0x1318   : > { %v1202_v60 = vpop.permute.xlu1 %1201 }
0x1319   : > { %1752 = vmatmul.mubr.msk.f32.vlgmr.msra.gmra.mxu1 %vm362_vm2, %v1202_v60 }
0x13d9   : > { %v1271_v62 = vpop.f32.mrf.mxu1 }
0x13da   : > { %v1275_v63 = vadd.f32 %v1608_v61, %v1271_v62 }
0x13db   : > { %v1753_v5 = vpop.f32.mrf.mxu1 }
0x13dc   : > { %1893 = vtanh.f32 %v1275_v63  ;;  %v1610_v16 = vmul.f32 -1.442695, %v1275_v63 }
0x13de   : > { %1895 = vpow2.f32 %v1610_v16 }
0x13e9   : > { %v1894_v9 = vpop.eup %1893 }
0x13ea   : > { %1285 = vrot.lane.b32.xlu0 %v1894_v9, %s2073_s28 }
0x13eb   : > { %v1896_v10 = vpop.eup %1895 }
0x13ec   : > { %v1279_v1 = vadd.f32 1.0, %v1896_v10 }
0x13ee   : > { %1305 = vperm.xlu0 %1836, %v1303_v11   ;;  %1897 = vrcp.f32 %v1279_v1 }
0x13f2   : > { %598 = vrot.lane.b32.xlu0 %v596_v12, %s2624_s9 }
0x13f6   : > { %836 = vrot.lane.b32.xlu0 %v834_v13, %s2624_s9 }
0x13fa   : > { %1074 = vrot.lane.b32.xlu0 %v1072_v14, %s2624_s9 }
0x13fb   : > { %v1898_v50 = vpop.eup %1897 }
0x13fc   : > { %v1283_v20 = vmul.f32 %v1898_v50, %v1190_v3 }
0x145c   : > { %v1286_v18 = vpop.permute.xlu0 %1285 }
0x145d   : > { %v1288_v52 = vmul.f32 %v1898_v50, %v1286_v18 }
0x145f   : > { %1290 = vrot.lane.b32.xlu1 %v1288_v52, %s2624_s9 }
0x1469   : > { %v1306_v2 = vpop.permute.xlu0 %1305 }
0x146a   : > { %vm1307_vm2 = vcmp.eq.s32.totalorder %v1306_v2, 1 }
0x146d   : > { %v599_v40 = vpop.permute.xlu0 %598 }
0x146e   : > { %1582 = vst.msk [vmem:[%s2455_s27 + $0x2] sm:$0x3] %vm352_vm0, %v599_v40 }
0x1471   : > { %v837_v42 = vpop.permute.xlu0 %836 }
0x1472   : > { %1592 = vst.msk [vmem:[%s2455_s27 + $0x6] sm:$0x3] %vm352_vm0, %v837_v42 }
0x1475   : > { %v1075_v19 = vpop.permute.xlu0 %1074 }
0x1476   : > { %1602 = vst.msk [vmem:[%s2455_s27 + $0xa] sm:$0x3] %vm352_vm0, %v1075_v19 }
0x14d1   : > { %v1291_v0 = vpop.permute.xlu1 %1290 }
0x14d2   : > { %v1293_v4 = vadd.f32 %v1291_v0, %v1283_v20 }
0x14d4   : > { %1899 = vtanh.f32 %v1293_v4  ;;  %v1309_v26 = vsel %vm1307_vm2, %v1293_v4, %v1190_v3 }
0x14e1   : > { %v1900_v21 = vpop.eup %1899 }
0x14e2   : > { %1296 = vrot.lane.b32.xlu1 %v1900_v21, %s2073_s28  ;;  %s1369_s28 = sshll.u32 %s2214_s16, 4  ;;  %s2505_s28 = int_to_ptr.vmem [resolvable:$true] %s1369_s28 }
0x14e3   : > { %s1929_s1 = scalar_lea.vmem %s2505_s28, 32 }
0x14e4   : > { %p1930_p12 = scmp.ne.s32.totalorder %s2505_s28, %s1929_s1 }
0x14e6   : > { %479 = vrot.lane.b32.xlu1 %v477_v22, %s2624_s9  ;;  %p1931_p0 = pnand %p1930_p12, %p2165_p9 }
0x14e8   : > { %p1932_p1 = pneg %p1931_p0 }
0x14ea   : > { %717 = vrot.lane.b32.xlu1 %v715_v23, %s2624_s9 }
0x14ee   : > { %955 = vrot.lane.b32.xlu1 %v953_v24, %s2624_s9 }
0x14f2   : > { %1193 = vrot.lane.b32.xlu1 %v1191_v25, %s2624_s9 }
0x14f6   : > { %1323 = vrot.lane.b32.xlu1 %v1309_v26, %s2075_s14  ;;  %s2502_s14 = scalar_lea.hbm %s2621_s4, %s1618_s10 }
0x1554   : > { %v1297_v29 = vpop.permute.xlu1 %1296 }
0x1555   : > { %v1299_v15 = vmul.f32 %v1898_v50, %v1297_v29 }
0x1557   : > { %v1308_v17 = vsel %vm1307_vm2, %v1299_v15, %v1189_v59  ;;  %v1310_v8 = vsel %vm1307_vm2, %v1299_v15, 0.0 }
0x1558   : > { %1318 = vrot.lane.b32.xlu0 %v1308_v17, %s2624_s9  ;;  %v480_v6 = vpop.permute.xlu1 %479 }
0x1559   : > { %483 = vst.msk [vmem:[%s2455_s27] sm:$0x3] %vm352_vm0, %v480_v6 }
0x155c   : > { %1312 = vrot.lane.b32.xlu0 %v1310_v8, %s2624_s9  ;;  %v718_v27 = vpop.permute.xlu1 %717  ;;  %s1933_s9 = sshll.u32 %s2076_s0, 4  ;;  %s1934_s9 = int_to_ptr.vmem [resolvable:$false] %s1933_s9 }
0x155d   : > { %1587 = vst.msk [vmem:[%s2455_s27 + $0x4] sm:$0x3] %vm352_vm0, %v718_v27  ;;  %s1935_s10 = scalar_lea.vmem %s1934_s9, 64  ;;  %p1936_p3 = scmp.lt.s32.totalorder %s2505_s28, %s1934_s9 }
0x155e   : > { %p1937_p5 = scmp.lt.s32.totalorder %s1935_s10, %s1929_s1 }
0x1560   : > { %v956_v28 = vpop.permute.xlu1 %955  ;;  %p1938_p6 = por %p1937_p5, %p1936_p3 }
0x1561   : > { %1597 = vst.msk [vmem:[%s2455_s27 + $0x8] sm:$0x3] %vm352_vm0, %v956_v28 }
0x1562   : > { %p1939_p7 = pnand %p1938_p6, %p1932_p1 }
0x1564   : > { %v1194_v30 = vpop.permute.xlu1 %1193 }
0x1565   : > { %1607 = vst.msk [vmem:[%s2455_s27 + $0xc] sm:$0x3] %vm352_vm0, %v1194_v30 }
0x1568   : > { %v1324_v31 = vpop.permute.xlu1 %1323 }
0x1569   : > { %1326 = vst.msk [vmem:[%s2260_s30] sm:$0x3] %vm352_vm0, %v1324_v31 }
0x15ca   : > { %v1319_v32 = vpop.permute.xlu0 %1318 }
0x15cb   : > { %1321 = vst.msk [vmem:[%s2214_s16] sm:$0x3] %vm352_vm0, %v1319_v32 }
0x15cc   : > { %1942 = shalt.err (!%p1939_p7)
}
0x15cd   : > { %s1943_s16 = scalar_lea.hbm %s2502_s14, 32  ;;  %s1947_s30 = scalar_lea.hbm %s2621_s4, 64 }
0x15ce   : > { %p1944_p10 = scmp.ne.s32.totalorder %s2502_s14, %s1943_s16  ;;  %p1948_p2 = scmp.lt.s32.totalorder %s2502_s14, %s2621_s4 }
0x15cf   : > { %p1949_p8 = scmp.lt.s32.totalorder %s1947_s30, %s1943_s16 }
0x15d0   : > { %p1945_p4 = pnand %p1944_p10, %p2165_p9 }
0x15d1   : > { %p1950_p12 = por %p1949_p8, %p1948_p2 }
0x15d2   : > { %p1946_p13 = pneg %p1945_p4 }
0x15d4   : > { %p1951_p0 = pnand %p1950_p12, %p1946_p13 }
0x15d6   : > { %1954 = shalt.err (!%p1951_p0)
}
0x15d7   : > { %1757 = dma.vmem_to_hbm [thread:$0]  (%p2165_p9), %s2505_s28, 32, %s2502_s14, %s2521_s21  }
0x15d8   : > { %s1955_s1 = scalar_lea.vmem %s2512_s11, 32  ;;  %s2077_s9 = smov [#allocation8]  }
0x15d9   : > { %p1956_p1 = scmp.ne.s32.totalorder %s2512_s11, %s1955_s1  ;;  %s1959_s10 = sshll.u32 %s2077_s9, 4  ;;  %s1960_s10 = int_to_ptr.vmem [resolvable:$false] %s1959_s10 }
0x15da   : > { %s1961_s16 = scalar_lea.vmem %s1960_s10, 64  ;;  %p1962_p6 = scmp.lt.s32.totalorder %s2512_s11, %s1960_s10 }
0x15db   : > { %p1957_p3 = pnand %p1956_p1, %p2165_p9  ;;  %p1963_p7 = scmp.lt.s32.totalorder %s1961_s16, %s1955_s1 }
0x15dd   : > { %p1958_p5 = pneg %p1957_p3  ;;  %p1964_p10 = por %p1963_p7, %p1962_p6 }
0x15df   : > { %p1965_p4 = pnand %p1964_p10, %p1958_p5 }
0x15e1   : > { %1968 = shalt.err (!%p1965_p4)
}
0x15e2   : > { %s1969_s12 = scalar_lea.hbm %s2510_s24, 32  ;;  %s1973_s17 = scalar_lea.hbm %s2622_s5, 64 }
0x15e3   : > { %p1970_p13 = scmp.ne.s32.totalorder %s2510_s24, %s1969_s12  ;;  %p1974_p12 = scmp.lt.s32.totalorder %s2510_s24, %s2622_s5 }
0x15e4   : > { %p1975_p0 = scmp.lt.s32.totalorder %s1973_s17, %s1969_s12 }
0x15e5   : > { %p1971_p2 = pnand %p1970_p13, %p2165_p9 }
0x15e6   : > { %p1976_p1 = por %p1975_p0, %p1974_p12 }
0x15e7   : > { %p1972_p8 = pneg %p1971_p2 }
0x15e9   : > { %p1977_p3 = pnand %p1976_p1, %p1972_p8 }
0x15eb   : > { %1980 = shalt.err (!%p1977_p3)
}
0x15ec   : > { %1758 = dma.vmem_to_hbm [thread:$0]  (%p2165_p9), %s2512_s11, 32, %s2510_s24, %s2521_s21   ;;  %v1313_v33 = vpop.permute.xlu0 %1312 }
0x15ed   : > { %1612 = vst.msk [vmem:[%s2455_s27 + $0xe] sm:$0x3] %vm352_vm0, %v1313_v33  ;;  %s1328_s0 = scalar_lea.sflag [#allocation4], %s2200_s25  ;;  %s1981_s1 = scalar_lea.vmem %s2495_s29, 256 }
0x15ee   : > { %p1982_p5 = scmp.ne.s32.totalorder %s2495_s29, %s1981_s1  ;;  %s2078_s9 = smov [#allocation5]  }
0x15ef   : > { %s1985_s10 = sshll.u32 %s2078_s9, 4  ;;  %s1986_s10 = int_to_ptr.vmem [resolvable:$false] %s1985_s10 }
0x15f0   : > { %p1983_p6 = pnand %p1982_p5, %p2165_p9  ;;  %s1987_s16 = scalar_lea.vmem %s1986_s10, 512 }
0x15f1   : > { %p1988_p10 = scmp.lt.s32.totalorder %s2495_s29, %s1986_s10  ;;  %p1989_p4 = scmp.lt.s32.totalorder %s1987_s16, %s1981_s1 }
0x15f2   : > { %p1984_p7 = pneg %p1983_p6 }
0x15f3   : > { %p1990_p13 = por %p1989_p4, %p1988_p10 }
0x15f5   : > { %p1991_p2 = pnand %p1990_p13, %p1984_p7 }
0x15f7   : > { %1994 = shalt.err (!%p1991_p2)
}
0x15f8   : > { %s1995_s27 = scalar_lea.hbm %s2519_s15, 256  ;;  %s1999_s21 = scalar_lea.hbm %s2620_s3, 512 }
0x15f9   : > { %p1996_p8 = scmp.ne.s32.totalorder %s2519_s15, %s1995_s27  ;;  %p2000_p1 = scmp.lt.s32.totalorder %s2519_s15, %s2620_s3 }
0x15fa   : > { %p2001_p3 = scmp.lt.s32.totalorder %s1999_s21, %s1995_s27 }
0x15fb   : > { %p1997_p12 = pnand %p1996_p8, %p2165_p9 }
0x15fc   : > { %p2002_p5 = por %p2001_p3, %p2000_p1 }
0x15fd   : > { %p1998_p0 = pneg %p1997_p12 }
0x15ff   : > { %p2003_p6 = pnand %p2002_p5, %p1998_p0 }
0x1601   : > { %2006 = shalt.err (!%p2003_p6)
}
0x1602   : > { %s2079_s14 = smov 2   ;;  %s2634_s17 = smov 32  }
0x1603   : > { %1756 = dma.vmem_to_hbm [thread:$0]  (%p2165_p9), %s2495_s29, 256, %s2519_s15, %s1328_s0, %s2634_s17, %s2634_s17, %s2079_s14  }
0x1604 PF: > { %s1394_s30 = sand.u32 1, %s2045_s18   ;;  %p2635_p7 = scmp.ge.s32.totalorder %s2065_s23, 2 }
0x1605   : > { %s1395_s13 = scalar_lea.sflag [#allocation4], %s1394_s30 }
0x1606   : > { %p1767_p10 = pnand %p2635_p7, %p2174_p11 }
0x1608   : > { %p1768_p4 = pneg %p1767_p10 }
0x160a   : > { %2036 = dma.done.wait (%p1768_p4), %s1395_s13, 256  }
0x160b   : > { %2038 = vsyncadd (%p1768_p4), %s1395_s13, 4294967040  ;;  %s2636_s6 = sadd.s32 4294967294, %s2065_s23  }
0x160c   : > { %s1403_s1 = sand.u32 1, %s2636_s6  }
0x160d   : > { %s1404_s9 = scalar_lea.sflag [#allocation7], %s1403_s1 }
0x160e   : > { %2040 = dma.done.wait (%p1768_p4), %s1404_s9, 64  }
0x160f   : > { %2042 = vsyncadd (%p1768_p4), %s1404_s9, 4294967232  ;;  %s25_s23 = sadd.s32 1, %s2065_s23   ;;  %s2637_s18 = smov %s2049_s19 }
0x1610   : > { %p22_p9 = scmp.ge.s32.totalorder %s25_s23, 4   ;;  %s2638_s19 = smov %s2053_s20 }
0x1611   : > { %s2639_s20 = smov %s2172_s7  ;;  %s2640_s21 = smov %s2061_s22 }
0x1612   : > { %s2641_s22 = smov %s2643_s26  ;;  %24 = sbr.rel (!%p22_p9) target bundleno = 11 (0xb), region = 140 }
0x1617   :  { %1418 = vsyncpa [#allocation3], 1 }
0x1618   :  { %1420 = vsyncpa [#allocation3 + $0x1], 1 }
0x1619   :  { %1421 = vsyncpa [#allocation4], 1 }
0x161a   :  { %1423 = vsyncpa [#allocation4 + $0x1], 1 }
0x161b   :  { %1424 = vsyncpa [#allocation7], 1 }
0x161c   :  { %1426 = vsyncpa [#allocation7 + $0x1], 1 }

</bundles_post_ra>
